<compile_context>
chip_gen: v5e
topology: v5e:2x2
jax: 0.10.0
libtpu: 0.0.40
codegen_flags: <defaults>
</compile_context>

<pallas_src>
import jax
import jax.numpy as jnp
from jax.experimental import pallas as pl
from jax.experimental.pallas import tpu as pltpu

# ---- model hyper-parameters (small, synthetic) -------------------------------
D_MODEL = 32
N_HEADS = 2
HEAD_DIM = D_MODEL // N_HEADS
D_FF = 64
N_LAYERS = 2
VOCAB = 100
N_SEG = 2
MAX_POS = 64
N_CLASSES = 2
CLS_PAD = 128            # lane-dense classifier output width (slice to 2 outside)
EPS = 1e-12              # BERT LayerNorm eps

KP_ORDER = (
    "emb_ln_g", "emb_ln_b",
    "wqkv", "bqkv", "wo", "bo",
    "ln1_g", "ln1_b", "w_ff1", "b_ff1", "w_ff2", "b_ff2", "ln2_g", "ln2_b",
    "clf_w", "clf_b",
)


# ---- in-kernel helpers -------------------------------------------------------
def _layer_norm(x, gamma, beta):
    mu = jnp.mean(x, axis=-1, keepdims=True)
    var = jnp.mean((x - mu) ** 2, axis=-1, keepdims=True)
    return (x - mu) * jax.lax.rsqrt(var + EPS) * gamma + beta


# ---- fused Pallas kernel -----------------------------------------------------
def fused_bert_kernel(x_ref, embg_ref, embb_ref,
                      wqkv_ref, bqkv_ref, wo_ref, bo_ref,
                      ln1g_ref, ln1b_ref, wff1_ref, bff1_ref,
                      wff2_ref, bff2_ref, ln2g_ref, ln2b_ref,
                      clfw_ref, clfb_ref, o_ref):
    """Embedding LN + all encoder layers + CLS classifier for TB sequences.

    x_ref block is (TB, S, D); stacked weights are full-array VMEM-resident.
    """
    TB, S, D = x_ref.shape
    M = TB * S
    H, Hd = N_HEADS, HEAD_DIM
    bf16 = jnp.bfloat16
    scale = jnp.float32(1.0 / (Hd ** 0.5))

    # all row-wise ops (projections, LN, GELU) work on the flat (M, D) stream
    h = _layer_norm(x_ref[...].reshape(M, D), embg_ref[...], embb_ref[...])   # f32

    for l in range(N_LAYERS):                       # static unroll over layers
        hb = h.astype(bf16)

        # ---- fused QKV: one (M, D) x (D, 3D) matmul --------------------------
        qkv = (jnp.dot(hb, wqkv_ref[l], preferred_element_type=jnp.float32)
               + bqkv_ref[l]).astype(bf16)          # (M, 3D)

        def _heads(z):                              # (M, D) -> (TB*H, S, Hd)
            return (z.reshape(TB, S, H, Hd)
                     .transpose(0, 2, 1, 3)
                     .reshape(TB * H, S, Hd))

        q = _heads(qkv[:, 0 * D:1 * D])
        k = _heads(qkv[:, 1 * D:2 * D])
        v = _heads(qkv[:, 2 * D:3 * D])

        # ---- per-sequence, per-head attention (single leading batch axis) ----
        s = jnp.einsum("gqe,gke->gqk", q, k,
                       preferred_element_type=jnp.float32) * scale     # (TB*H,S,S)
        s = s - jnp.max(s, axis=-1, keepdims=True)
        p = jnp.exp(s)
        p = p * pl.reciprocal(jnp.sum(p, axis=-1, keepdims=True), approx=True)

        ctx = jnp.einsum("gqk,gke->gqe", p.astype(bf16), v,
                         preferred_element_type=jnp.float32)            # (TB*H,S,Hd)
        ctx = (ctx.reshape(TB, H, S, Hd).transpose(0, 2, 1, 3)
                  .reshape(M, D)).astype(bf16)                          # concat heads

        # ---- single output projection (no per-head dots + sum) --------------
        attn = jnp.dot(ctx, wo_ref[l],
                       preferred_element_type=jnp.float32) + bo_ref[l]  # (M, D)
        h1 = _layer_norm(h + attn, ln1g_ref[l], ln1b_ref[l])

        # ---- feed-forward ----------------------------------------------------
        ff = jnp.dot(h1.astype(bf16), wff1_ref[l],
                     preferred_element_type=jnp.float32) + bff1_ref[l]
        # TODO(synk): PyTorch nn.GELU default is erf; tanh-approx kept for a
        # Mosaic-friendly lowering (small logit deviation).
        ff = jax.nn.gelu(ff, approximate=True)
        ff = jnp.dot(ff.astype(bf16), wff2_ref[l],
                     preferred_element_type=jnp.float32) + bff2_ref[l]
        h = _layer_norm(h1 + ff, ln2g_ref[l], ln2b_ref[l])

    # ---- classifier on all TB CLS rows at once; lane-padded store ------------
    cls = h.reshape(TB, S, D)[:, 0, :]                                   # (TB, D)
    logits = jnp.dot(cls.astype(bf16), clfw_ref[...],
                     preferred_element_type=jnp.float32) + clfb_ref[...]  # (TB, CLS_PAD)
    o_ref[...] = logits[:, None, :]


# ---- pallas_call wrapper -----------------------------------------------------
def _full_spec(shape):
    # whole-array block, always mapped to block (0, ..., 0)
    return pl.BlockSpec(shape, lambda g, _n=len(shape): (0,) * _n)


def _batch_grid_steps(batch):
    """v7x has 2 TensorCores per chip: split the batch across them.
    On v5e/v6e (single TC) an extra grid step is pure per-step overhead."""
    try:
        kind = jax.devices()[0].device_kind.lower()
    except Exception:
        kind = ""
    if batch % 2 == 0 and ("v7" in kind or "7x" in kind):
        return 2
    return 1


def prepare_params(params):
    """One-time weight re-layout: stack per-layer weights, fuse Q|K|V along
    the output lane axis, cast matmul weights to bf16, lane-pad the classifier.
    Call ONCE outside the per-forward path (hoisted per perf review)."""
    bf16 = jnp.bfloat16

    def stack(name):
        return jnp.stack([lp[name] for lp in params["layers"]], axis=0)

    kp = {
        "emb_ln_g": params["emb_ln_g"], "emb_ln_b": params["emb_ln_b"],
        "wqkv": jnp.concatenate([stack("wq"), stack("wk"), stack("wv")],
                                axis=-1).astype(bf16),          # (L, D, 3D)
        "bqkv": jnp.concatenate([stack("bq"), stack("bk"), stack("bv")],
                                axis=-1),                       # (L, 1, 3D)
        "wo": stack("wo").astype(bf16), "bo": stack("bo"),      # (L, D, D)
        "ln1_g": stack("ln1_g"), "ln1_b": stack("ln1_b"),
        "w_ff1": stack("w_ff1").astype(bf16), "b_ff1": stack("b_ff1"),
        "w_ff2": stack("w_ff2").astype(bf16), "b_ff2": stack("b_ff2"),
        "ln2_g": stack("ln2_g"), "ln2_b": stack("ln2_b"),
        "clf_w": jnp.pad(params["clf_w"],
                         ((0, 0), (0, CLS_PAD - N_CLASSES))).astype(bf16),
        "clf_b": jnp.pad(params["clf_b"], ((0, 0), (0, CLS_PAD - N_CLASSES))),
    }
    return {
        "tok_emb": params["tok_emb"], "seg_emb": params["seg_emb"],
        "pos_emb": params["pos_emb"], "kernel": kp,
    }


@jax.jit
def next_sen_clf_forward(prepared, input_ids, seg_ids):
    B, S = input_ids.shape
    assert S <= MAX_POS, "sequence length exceeds positional table"

    # glue: embedding gathers (data-dependent) in plain JAX
    x = (prepared["tok_emb"][input_ids]
         + prepared["seg_emb"][seg_ids]
         + prepared["pos_emb"][:S][None, :, :]).astype(jnp.float32)

    kp = prepared["kernel"]
    weights = [kp[name] for name in KP_ORDER]

    steps = _batch_grid_steps(B)          # 2 on v7x (2 TCs), else 1
    TB = B // steps                       # sequences processed per grid step

    out = pl.pallas_call(
        fused_bert_kernel,
        out_shape=jax.ShapeDtypeStruct((B, 1, CLS_PAD), jnp.float32),
        grid=(steps,),
        in_specs=([pl.BlockSpec((TB, S, D_MODEL), lambda g: (g, 0, 0))]
                  + [_full_spec(w.shape) for w in weights]),
        out_specs=pl.BlockSpec((TB, 1, CLS_PAD), lambda g: (g, 0, 0)),
        compiler_params=pltpu.CompilerParams(
            dimension_semantics=("parallel",)),   # only pays off on v7x's 2 TCs
    )(x, *weights)

    return out[:, 0, :N_CLASSES]                  # (B, 2) — CLS logits


# ---- parameter init (deterministic, synthetic) -------------------------------
def init_params(key):
    keys = iter(jax.random.split(key, 8 + N_LAYERS * 16))

    def nrm(shape):
        return (0.02 * jax.random.normal(next(keys), shape)).astype(jnp.float32)

    params = {
        "tok_emb": nrm((VOCAB, D_MODEL)),
        "seg_emb": nrm((N_SEG, D_MODEL)),
        "pos_emb": nrm((MAX_POS, D_MODEL)),
        "emb_ln_g": jnp.ones((1, D_MODEL), jnp.float32),
        "emb_ln_b": jnp.zeros((1, D_MODEL), jnp.float32),
        "clf_w": nrm((D_MODEL, N_CLASSES)),
        "clf_b": jnp.zeros((1, N_CLASSES), jnp.float32),
        "layers": [],
    }
    for _ in range(N_LAYERS):
        lp = {
            "wq": nrm((D_MODEL, D_MODEL)), "bq": jnp.zeros((1, D_MODEL), jnp.float32),
            "wk": nrm((D_MODEL, D_MODEL)), "bk": jnp.zeros((1, D_MODEL), jnp.float32),
            "wv": nrm((D_MODEL, D_MODEL)), "bv": jnp.zeros((1, D_MODEL), jnp.float32),
            "wo": nrm((D_MODEL, D_MODEL)), "bo": jnp.zeros((1, D_MODEL), jnp.float32),
            "ln1_g": jnp.ones((1, D_MODEL), jnp.float32),
            "ln1_b": jnp.zeros((1, D_MODEL), jnp.float32),
            "w_ff1": nrm((D_MODEL, D_FF)), "b_ff1": jnp.zeros((1, D_FF), jnp.float32),
            "w_ff2": nrm((D_FF, D_MODEL)), "b_ff2": jnp.zeros((1, D_MODEL), jnp.float32),
            "ln2_g": jnp.ones((1, D_MODEL), jnp.float32),
            "ln2_b": jnp.zeros((1, D_MODEL), jnp.float32),
        }
        params["layers"].append(lp)
    return params


# ---- demo --------------------------------------------------------------------
if __name__ == "__main__":
    B, S = 2, 8
    root = jax.random.PRNGKey(0)
    k_param, k_ids = jax.random.split(root)

    params = init_params(k_param)
    prepared = prepare_params(params)     # weight re-layout hoisted: done once

    input_ids = jax.random.randint(k_ids, (B, S), 0, VOCAB, dtype=jnp.int32)
    seg_ids = jnp.concatenate(
        [jnp.zeros((B, S // 2), jnp.int32), jnp.ones((B, S - S // 2), jnp.int32)],
        axis=1)

    out = next_sen_clf_forward(prepared, input_ids, seg_ids)
    out = jax.block_until_ready(out)
    assert out.shape == (B, N_CLASSES) and out.dtype == jnp.float32
    assert bool(jnp.all(jnp.isfinite(out)))
    print("KERNEL_OK")
</pallas_src>

<mosaic_0001>
module attributes {stable_mosaic.version = 11 : i64} {
  func.func @fused_bert_kernel(%arg0: i32, %arg1: memref<2x8x32xf32, #tpu.memory_space<vmem>>, %arg2: memref<1x32xf32, #tpu.memory_space<vmem>>, %arg3: memref<1x32xf32, #tpu.memory_space<vmem>>, %arg4: memref<2x32x96xbf16, #tpu.memory_space<vmem>>, %arg5: memref<2x1x96xf32, #tpu.memory_space<vmem>>, %arg6: memref<2x32x32xbf16, #tpu.memory_space<vmem>>, %arg7: memref<2x1x32xf32, #tpu.memory_space<vmem>>, %arg8: memref<2x1x32xf32, #tpu.memory_space<vmem>>, %arg9: memref<2x1x32xf32, #tpu.memory_space<vmem>>, %arg10: memref<2x32x64xbf16, #tpu.memory_space<vmem>>, %arg11: memref<2x1x64xf32, #tpu.memory_space<vmem>>, %arg12: memref<2x64x32xbf16, #tpu.memory_space<vmem>>, %arg13: memref<2x1x32xf32, #tpu.memory_space<vmem>>, %arg14: memref<2x1x32xf32, #tpu.memory_space<vmem>>, %arg15: memref<2x1x32xf32, #tpu.memory_space<vmem>>, %arg16: memref<32x128xbf16, #tpu.memory_space<vmem>>, %arg17: memref<1x128xf32, #tpu.memory_space<vmem>>, %arg18: memref<2x1x128xf32, #tpu.memory_space<vmem>>) attributes {dimension_semantics = [#tpu.dimension_semantics<parallel>], iteration_bounds = array<i64: 1>, scalar_prefetch = 0 : i64, scratch_operands = 0 : i64, tpu.core_type = #tpu.core_type<tc>, window_params = [{transform_indices = @transform_0, window_bounds = array<i64: 2, 8, 32>}, {pipeline_mode = #tpu.pipeline_mode<synchronous>, transform_indices = @transform_1, window_bounds = array<i64: 1, 32>}, {pipeline_mode = #tpu.pipeline_mode<synchronous>, transform_indices = @transform_2, window_bounds = array<i64: 1, 32>}, {pipeline_mode = #tpu.pipeline_mode<synchronous>, transform_indices = @transform_3, window_bounds = array<i64: 2, 32, 96>}, {pipeline_mode = #tpu.pipeline_mode<synchronous>, transform_indices = @transform_4, window_bounds = array<i64: 2, 1, 96>}, {pipeline_mode = #tpu.pipeline_mode<synchronous>, transform_indices = @transform_5, window_bounds = array<i64: 2, 32, 32>}, {pipeline_mode = #tpu.pipeline_mode<synchronous>, transform_indices = @transform_6, window_bounds = array<i64: 2, 1, 32>}, {pipeline_mode = #tpu.pipeline_mode<synchronous>, transform_indices = @transform_7, window_bounds = array<i64: 2, 1, 32>}, {pipeline_mode = #tpu.pipeline_mode<synchronous>, transform_indices = @transform_8, window_bounds = array<i64: 2, 1, 32>}, {pipeline_mode = #tpu.pipeline_mode<synchronous>, transform_indices = @transform_9, window_bounds = array<i64: 2, 32, 64>}, {pipeline_mode = #tpu.pipeline_mode<synchronous>, transform_indices = @transform_10, window_bounds = array<i64: 2, 1, 64>}, {pipeline_mode = #tpu.pipeline_mode<synchronous>, transform_indices = @transform_11, window_bounds = array<i64: 2, 64, 32>}, {pipeline_mode = #tpu.pipeline_mode<synchronous>, transform_indices = @transform_12, window_bounds = array<i64: 2, 1, 32>}, {pipeline_mode = #tpu.pipeline_mode<synchronous>, transform_indices = @transform_13, window_bounds = array<i64: 2, 1, 32>}, {pipeline_mode = #tpu.pipeline_mode<synchronous>, transform_indices = @transform_14, window_bounds = array<i64: 2, 1, 32>}, {pipeline_mode = #tpu.pipeline_mode<synchronous>, transform_indices = @transform_15, window_bounds = array<i64: 32, 128>}, {pipeline_mode = #tpu.pipeline_mode<synchronous>, transform_indices = @transform_16, window_bounds = array<i64: 1, 128>}, {transform_indices = @transform_17, window_bounds = array<i64: 2, 1, 128>}]} {
    %c0 = arith.constant 0 : index
    %c0_0 = arith.constant 0 : index
    %c0_1 = arith.constant 0 : index
    %0 = vector.load %arg1[%c0, %c0_0, %c0_1] : memref<2x8x32xf32, #tpu.memory_space<vmem>>, vector<2x8x32xf32>
    %1 = vector.shape_cast %0 : vector<2x8x32xf32> to vector<16x32xf32>
    %c0_2 = arith.constant 0 : index
    %c0_3 = arith.constant 0 : index
    %2 = vector.load %arg2[%c0_2, %c0_3] : memref<1x32xf32, #tpu.memory_space<vmem>>, vector<1x32xf32>
    %c0_4 = arith.constant 0 : index
    %c0_5 = arith.constant 0 : index
    %3 = vector.load %arg3[%c0_4, %c0_5] : memref<1x32xf32, #tpu.memory_space<vmem>>, vector<1x32xf32>
    %cst = arith.constant dense<0.000000e+00> : vector<16xf32>
    %4 = vector.multi_reduction <add>, %1, %cst [1] : vector<16x32xf32> to vector<16xf32>
    %5 = vector.shape_cast %4 : vector<16xf32> to vector<16x1xf32>
    %cst_6 = arith.constant 3.200000e+01 : f32
    %6 = vector.broadcast %cst_6 : f32 to vector<16x1xf32>
    %7 = arith.divf %5, %6 : vector<16x1xf32>
    %8 = vector.broadcast %7 : vector<16x1xf32> to vector<16x32xf32>
    %9 = arith.subf %1, %8 : vector<16x32xf32>
    %10 = arith.mulf %9, %9 : vector<16x32xf32>
    %cst_7 = arith.constant dense<0.000000e+00> : vector<16xf32>
    %11 = vector.multi_reduction <add>, %10, %cst_7 [1] : vector<16x32xf32> to vector<16xf32>
    %12 = vector.shape_cast %11 : vector<16xf32> to vector<16x1xf32>
    %cst_8 = arith.constant 3.200000e+01 : f32
    %13 = vector.broadcast %cst_8 : f32 to vector<16x1xf32>
    %14 = arith.divf %12, %13 : vector<16x1xf32>
    %15 = vector.broadcast %7 : vector<16x1xf32> to vector<16x32xf32>
    %16 = arith.subf %1, %15 : vector<16x32xf32>
    %cst_9 = arith.constant 9.99999996E-13 : f32
    %17 = vector.broadcast %cst_9 : f32 to vector<16x1xf32>
    %18 = arith.addf %14, %17 : vector<16x1xf32>
    %19 = math.rsqrt %18 : vector<16x1xf32>
    %20 = vector.broadcast %19 : vector<16x1xf32> to vector<16x32xf32>
    %21 = arith.mulf %16, %20 : vector<16x32xf32>
    %22 = vector.broadcast %2 : vector<1x32xf32> to vector<16x32xf32>
    %23 = arith.mulf %21, %22 : vector<16x32xf32>
    %24 = vector.broadcast %3 : vector<1x32xf32> to vector<16x32xf32>
    %25 = arith.addf %23, %24 : vector<16x32xf32>
    %26 = arith.truncf %25 : vector<16x32xf32> to vector<16x32xbf16>
    %c0_10 = arith.constant 0 : index
    %c0_11 = arith.constant 0 : index
    %c0_12 = arith.constant 0 : index
    %27 = vector.load %arg4[%c0_10, %c0_11, %c0_12] : memref<2x32x96xbf16, #tpu.memory_space<vmem>>, vector<1x32x96xbf16>
    %28 = vector.shape_cast %27 : vector<1x32x96xbf16> to vector<32x96xbf16>
    %cst_13 = arith.constant dense<0.000000e+00> : vector<16x96xf32>
    %29 = tpu.matmul %26, %28, %cst_13 {dimension_numbers = #tpu.dot_dimension_numbers<[1], [0], [0], [1], [0, 0, 1, 1], [], []>} : vector<16x32xbf16>, vector<32x96xbf16>, vector<16x96xf32> -> vector<16x96xf32>
    %c0_14 = arith.constant 0 : index
    %c0_15 = arith.constant 0 : index
    %c0_16 = arith.constant 0 : index
    %30 = vector.load %arg5[%c0_14, %c0_15, %c0_16] : memref<2x1x96xf32, #tpu.memory_space<vmem>>, vector<1x1x96xf32>
    %31 = vector.shape_cast %30 : vector<1x1x96xf32> to vector<1x96xf32>
    %32 = vector.broadcast %31 : vector<1x96xf32> to vector<16x96xf32>
    %33 = arith.addf %29, %32 : vector<16x96xf32>
    %34 = arith.truncf %33 : vector<16x96xf32> to vector<16x96xbf16>
    %35 = vector.extract_strided_slice %34 {offsets = [0, 0], sizes = [16, 32], strides = [1, 1]} : vector<16x96xbf16> to vector<16x32xbf16>
    %36 = vector.shape_cast %35 : vector<16x32xbf16> to vector<2x8x2x16xbf16>
    %37 = tpu.transpose %36, [0, 2, 1, 3] : vector<2x8x2x16xbf16> -> vector<2x2x8x16xbf16>
    %38 = vector.shape_cast %37 : vector<2x2x8x16xbf16> to vector<4x8x16xbf16>
    %39 = vector.extract_strided_slice %34 {offsets = [0, 32], sizes = [16, 32], strides = [1, 1]} : vector<16x96xbf16> to vector<16x32xbf16>
    %40 = vector.shape_cast %39 : vector<16x32xbf16> to vector<2x8x2x16xbf16>
    %41 = tpu.transpose %40, [0, 2, 1, 3] : vector<2x8x2x16xbf16> -> vector<2x2x8x16xbf16>
    %42 = vector.shape_cast %41 : vector<2x2x8x16xbf16> to vector<4x8x16xbf16>
    %43 = vector.extract_strided_slice %34 {offsets = [0, 64], sizes = [16, 32], strides = [1, 1]} : vector<16x96xbf16> to vector<16x32xbf16>
    %44 = vector.shape_cast %43 : vector<16x32xbf16> to vector<2x8x2x16xbf16>
    %45 = tpu.transpose %44, [0, 2, 1, 3] : vector<2x8x2x16xbf16> -> vector<2x2x8x16xbf16>
    %46 = vector.shape_cast %45 : vector<2x2x8x16xbf16> to vector<4x8x16xbf16>
    "tpu.trace_start"() <{level = 10 : i32, message = "gqe,gke->gqk"}> : () -> ()
    %cst_17 = arith.constant dense<0.000000e+00> : vector<4x8x8xf32>
    %47 = tpu.matmul %38, %42, %cst_17 {dimension_numbers = #tpu.dot_dimension_numbers<[2], [2], [1], [1], [0, 0, 0, 1, 1, 1], [0], [0]>} : vector<4x8x16xbf16>, vector<4x8x16xbf16>, vector<4x8x8xf32> -> vector<4x8x8xf32>
    "tpu.trace_stop"() : () -> ()
    %cst_18 = arith.constant 2.500000e-01 : f32
    %48 = vector.broadcast %cst_18 : f32 to vector<4x8x8xf32>
    %49 = arith.mulf %47, %48 : vector<4x8x8xf32>
    %cst_19 = arith.constant dense<0xFF800000> : vector<4x8xf32>
    %50 = vector.multi_reduction <maximumf>, %49, %cst_19 [2] : vector<4x8x8xf32> to vector<4x8xf32>
    %51 = vector.shape_cast %50 : vector<4x8xf32> to vector<4x8x1xf32>
    %52 = vector.broadcast %51 : vector<4x8x1xf32> to vector<4x8x8xf32>
    %53 = arith.subf %49, %52 : vector<4x8x8xf32>
    %54 = math.exp %53 : vector<4x8x8xf32>
    %cst_20 = arith.constant dense<0.000000e+00> : vector<4x8xf32>
    %55 = vector.multi_reduction <add>, %54, %cst_20 [2] : vector<4x8x8xf32> to vector<4x8xf32>
    %56 = vector.shape_cast %55 : vector<4x8xf32> to vector<4x8x1xf32>
    %57 = tpu.reciprocal %56 {approx = true} : vector<4x8x1xf32> -> vector<4x8x1xf32>
    %58 = vector.broadcast %57 : vector<4x8x1xf32> to vector<4x8x8xf32>
    %59 = arith.mulf %54, %58 : vector<4x8x8xf32>
    %60 = arith.truncf %59 : vector<4x8x8xf32> to vector<4x8x8xbf16>
    "tpu.trace_start"() <{level = 10 : i32, message = "gqk,gke->gqe"}> : () -> ()
    %cst_21 = arith.constant dense<0.000000e+00> : vector<4x8x16xf32>
    %61 = tpu.matmul %60, %46, %cst_21 {dimension_numbers = #tpu.dot_dimension_numbers<[2], [1], [1], [2], [0, 0, 0, 1, 1, 2], [0], [0]>} : vector<4x8x8xbf16>, vector<4x8x16xbf16>, vector<4x8x16xf32> -> vector<4x8x16xf32>
    "tpu.trace_stop"() : () -> ()
    %62 = vector.shape_cast %61 : vector<4x8x16xf32> to vector<2x2x8x16xf32>
    %63 = tpu.transpose %62, [0, 2, 1, 3] : vector<2x2x8x16xf32> -> vector<2x8x2x16xf32>
    %64 = vector.shape_cast %63 : vector<2x8x2x16xf32> to vector<16x32xf32>
    %65 = arith.truncf %64 : vector<16x32xf32> to vector<16x32xbf16>
    %c0_22 = arith.constant 0 : index
    %c0_23 = arith.constant 0 : index
    %c0_24 = arith.constant 0 : index
    %66 = vector.load %arg6[%c0_22, %c0_23, %c0_24] : memref<2x32x32xbf16, #tpu.memory_space<vmem>>, vector<1x32x32xbf16>
    %67 = vector.shape_cast %66 : vector<1x32x32xbf16> to vector<32x32xbf16>
    %cst_25 = arith.constant dense<0.000000e+00> : vector<16x32xf32>
    %68 = tpu.matmul %65, %67, %cst_25 {dimension_numbers = #tpu.dot_dimension_numbers<[1], [0], [0], [1], [0, 0, 1, 1], [], []>} : vector<16x32xbf16>, vector<32x32xbf16>, vector<16x32xf32> -> vector<16x32xf32>
    %c0_26 = arith.constant 0 : index
    %c0_27 = arith.constant 0 : index
    %c0_28 = arith.constant 0 : index
    %69 = vector.load %arg7[%c0_26, %c0_27, %c0_28] : memref<2x1x32xf32, #tpu.memory_space<vmem>>, vector<1x1x32xf32>
    %70 = vector.shape_cast %69 : vector<1x1x32xf32> to vector<1x32xf32>
    %71 = vector.broadcast %70 : vector<1x32xf32> to vector<16x32xf32>
    %72 = arith.addf %68, %71 : vector<16x32xf32>
    %73 = arith.addf %25, %72 : vector<16x32xf32>
    %c0_29 = arith.constant 0 : index
    %c0_30 = arith.constant 0 : index
    %c0_31 = arith.constant 0 : index
    %74 = vector.load %arg8[%c0_29, %c0_30, %c0_31] : memref<2x1x32xf32, #tpu.memory_space<vmem>>, vector<1x1x32xf32>
    %75 = vector.shape_cast %74 : vector<1x1x32xf32> to vector<1x32xf32>
    %c0_32 = arith.constant 0 : index
    %c0_33 = arith.constant 0 : index
    %c0_34 = arith.constant 0 : index
    %76 = vector.load %arg9[%c0_32, %c0_33, %c0_34] : memref<2x1x32xf32, #tpu.memory_space<vmem>>, vector<1x1x32xf32>
    %77 = vector.shape_cast %76 : vector<1x1x32xf32> to vector<1x32xf32>
    %cst_35 = arith.constant dense<0.000000e+00> : vector<16xf32>
    %78 = vector.multi_reduction <add>, %73, %cst_35 [1] : vector<16x32xf32> to vector<16xf32>
    %79 = vector.shape_cast %78 : vector<16xf32> to vector<16x1xf32>
    %cst_36 = arith.constant 3.200000e+01 : f32
    %80 = vector.broadcast %cst_36 : f32 to vector<16x1xf32>
    %81 = arith.divf %79, %80 : vector<16x1xf32>
    %82 = vector.broadcast %81 : vector<16x1xf32> to vector<16x32xf32>
    %83 = arith.subf %73, %82 : vector<16x32xf32>
    %84 = arith.mulf %83, %83 : vector<16x32xf32>
    %cst_37 = arith.constant dense<0.000000e+00> : vector<16xf32>
    %85 = vector.multi_reduction <add>, %84, %cst_37 [1] : vector<16x32xf32> to vector<16xf32>
    %86 = vector.shape_cast %85 : vector<16xf32> to vector<16x1xf32>
    %cst_38 = arith.constant 3.200000e+01 : f32
    %87 = vector.broadcast %cst_38 : f32 to vector<16x1xf32>
    %88 = arith.divf %86, %87 : vector<16x1xf32>
    %89 = vector.broadcast %81 : vector<16x1xf32> to vector<16x32xf32>
    %90 = arith.subf %73, %89 : vector<16x32xf32>
    %cst_39 = arith.constant 9.99999996E-13 : f32
    %91 = vector.broadcast %cst_39 : f32 to vector<16x1xf32>
    %92 = arith.addf %88, %91 : vector<16x1xf32>
    %93 = math.rsqrt %92 : vector<16x1xf32>
    %94 = vector.broadcast %93 : vector<16x1xf32> to vector<16x32xf32>
    %95 = arith.mulf %90, %94 : vector<16x32xf32>
    %96 = vector.broadcast %75 : vector<1x32xf32> to vector<16x32xf32>
    %97 = arith.mulf %95, %96 : vector<16x32xf32>
    %98 = vector.broadcast %77 : vector<1x32xf32> to vector<16x32xf32>
    %99 = arith.addf %97, %98 : vector<16x32xf32>
    %100 = arith.truncf %99 : vector<16x32xf32> to vector<16x32xbf16>
    %c0_40 = arith.constant 0 : index
    %c0_41 = arith.constant 0 : index
    %c0_42 = arith.constant 0 : index
    %101 = vector.load %arg10[%c0_40, %c0_41, %c0_42] : memref<2x32x64xbf16, #tpu.memory_space<vmem>>, vector<1x32x64xbf16>
    %102 = vector.shape_cast %101 : vector<1x32x64xbf16> to vector<32x64xbf16>
    %cst_43 = arith.constant dense<0.000000e+00> : vector<16x64xf32>
    %103 = tpu.matmul %100, %102, %cst_43 {dimension_numbers = #tpu.dot_dimension_numbers<[1], [0], [0], [1], [0, 0, 1, 1], [], []>} : vector<16x32xbf16>, vector<32x64xbf16>, vector<16x64xf32> -> vector<16x64xf32>
    %c0_44 = arith.constant 0 : index
    %c0_45 = arith.constant 0 : index
    %c0_46 = arith.constant 0 : index
    %104 = vector.load %arg11[%c0_44, %c0_45, %c0_46] : memref<2x1x64xf32, #tpu.memory_space<vmem>>, vector<1x1x64xf32>
    %105 = vector.shape_cast %104 : vector<1x1x64xf32> to vector<1x64xf32>
    %106 = vector.broadcast %105 : vector<1x64xf32> to vector<16x64xf32>
    %107 = arith.addf %103, %106 : vector<16x64xf32>
    %108 = arith.mulf %107, %107 : vector<16x64xf32>
    %109 = arith.mulf %107, %108 : vector<16x64xf32>
    %cst_47 = arith.constant 4.471500e-02 : f32
    %110 = vector.broadcast %cst_47 : f32 to vector<16x64xf32>
    %111 = arith.mulf %110, %109 : vector<16x64xf32>
    %112 = arith.addf %107, %111 : vector<16x64xf32>
    %cst_48 = arith.constant 0.797884583 : f32
    %113 = vector.broadcast %cst_48 : f32 to vector<16x64xf32>
    %114 = arith.mulf %113, %112 : vector<16x64xf32>
    %115 = math.tanh %114 : vector<16x64xf32>
    %cst_49 = arith.constant 1.000000e+00 : f32
    %116 = vector.broadcast %cst_49 : f32 to vector<16x64xf32>
    %117 = arith.addf %116, %115 : vector<16x64xf32>
    %cst_50 = arith.constant 5.000000e-01 : f32
    %118 = vector.broadcast %cst_50 : f32 to vector<16x64xf32>
    %119 = arith.mulf %118, %117 : vector<16x64xf32>
    %120 = arith.mulf %107, %119 : vector<16x64xf32>
    %121 = arith.truncf %120 : vector<16x64xf32> to vector<16x64xbf16>
    %c0_51 = arith.constant 0 : index
    %c0_52 = arith.constant 0 : index
    %c0_53 = arith.constant 0 : index
    %122 = vector.load %arg12[%c0_51, %c0_52, %c0_53] : memref<2x64x32xbf16, #tpu.memory_space<vmem>>, vector<1x64x32xbf16>
    %123 = vector.shape_cast %122 : vector<1x64x32xbf16> to vector<64x32xbf16>
    %cst_54 = arith.constant dense<0.000000e+00> : vector<16x32xf32>
    %124 = tpu.matmul %121, %123, %cst_54 {dimension_numbers = #tpu.dot_dimension_numbers<[1], [0], [0], [1], [0, 0, 1, 1], [], []>} : vector<16x64xbf16>, vector<64x32xbf16>, vector<16x32xf32> -> vector<16x32xf32>
    %c0_55 = arith.constant 0 : index
    %c0_56 = arith.constant 0 : index
    %c0_57 = arith.constant 0 : index
    %125 = vector.load %arg13[%c0_55, %c0_56, %c0_57] : memref<2x1x32xf32, #tpu.memory_space<vmem>>, vector<1x1x32xf32>
    %126 = vector.shape_cast %125 : vector<1x1x32xf32> to vector<1x32xf32>
    %127 = vector.broadcast %126 : vector<1x32xf32> to vector<16x32xf32>
    %128 = arith.addf %124, %127 : vector<16x32xf32>
    %129 = arith.addf %99, %128 : vector<16x32xf32>
    %c0_58 = arith.constant 0 : index
    %c0_59 = arith.constant 0 : index
    %c0_60 = arith.constant 0 : index
    %130 = vector.load %arg14[%c0_58, %c0_59, %c0_60] : memref<2x1x32xf32, #tpu.memory_space<vmem>>, vector<1x1x32xf32>
    %131 = vector.shape_cast %130 : vector<1x1x32xf32> to vector<1x32xf32>
    %c0_61 = arith.constant 0 : index
    %c0_62 = arith.constant 0 : index
    %c0_63 = arith.constant 0 : index
    %132 = vector.load %arg15[%c0_61, %c0_62, %c0_63] : memref<2x1x32xf32, #tpu.memory_space<vmem>>, vector<1x1x32xf32>
    %133 = vector.shape_cast %132 : vector<1x1x32xf32> to vector<1x32xf32>
    %cst_64 = arith.constant dense<0.000000e+00> : vector<16xf32>
    %134 = vector.multi_reduction <add>, %129, %cst_64 [1] : vector<16x32xf32> to vector<16xf32>
    %135 = vector.shape_cast %134 : vector<16xf32> to vector<16x1xf32>
    %cst_65 = arith.constant 3.200000e+01 : f32
    %136 = vector.broadcast %cst_65 : f32 to vector<16x1xf32>
    %137 = arith.divf %135, %136 : vector<16x1xf32>
    %138 = vector.broadcast %137 : vector<16x1xf32> to vector<16x32xf32>
    %139 = arith.subf %129, %138 : vector<16x32xf32>
    %140 = arith.mulf %139, %139 : vector<16x32xf32>
    %cst_66 = arith.constant dense<0.000000e+00> : vector<16xf32>
    %141 = vector.multi_reduction <add>, %140, %cst_66 [1] : vector<16x32xf32> to vector<16xf32>
    %142 = vector.shape_cast %141 : vector<16xf32> to vector<16x1xf32>
    %cst_67 = arith.constant 3.200000e+01 : f32
    %143 = vector.broadcast %cst_67 : f32 to vector<16x1xf32>
    %144 = arith.divf %142, %143 : vector<16x1xf32>
    %145 = vector.broadcast %137 : vector<16x1xf32> to vector<16x32xf32>
    %146 = arith.subf %129, %145 : vector<16x32xf32>
    %cst_68 = arith.constant 9.99999996E-13 : f32
    %147 = vector.broadcast %cst_68 : f32 to vector<16x1xf32>
    %148 = arith.addf %144, %147 : vector<16x1xf32>
    %149 = math.rsqrt %148 : vector<16x1xf32>
    %150 = vector.broadcast %149 : vector<16x1xf32> to vector<16x32xf32>
    %151 = arith.mulf %146, %150 : vector<16x32xf32>
    %152 = vector.broadcast %131 : vector<1x32xf32> to vector<16x32xf32>
    %153 = arith.mulf %151, %152 : vector<16x32xf32>
    %154 = vector.broadcast %133 : vector<1x32xf32> to vector<16x32xf32>
    %155 = arith.addf %153, %154 : vector<16x32xf32>
    %156 = arith.truncf %155 : vector<16x32xf32> to vector<16x32xbf16>
    %c1 = arith.constant 1 : index
    %c0_69 = arith.constant 0 : index
    %c0_70 = arith.constant 0 : index
    %157 = vector.load %arg4[%c1, %c0_69, %c0_70] : memref<2x32x96xbf16, #tpu.memory_space<vmem>>, vector<1x32x96xbf16>
    %158 = vector.shape_cast %157 : vector<1x32x96xbf16> to vector<32x96xbf16>
    %cst_71 = arith.constant dense<0.000000e+00> : vector<16x96xf32>
    %159 = tpu.matmul %156, %158, %cst_71 {dimension_numbers = #tpu.dot_dimension_numbers<[1], [0], [0], [1], [0, 0, 1, 1], [], []>} : vector<16x32xbf16>, vector<32x96xbf16>, vector<16x96xf32> -> vector<16x96xf32>
    %c1_72 = arith.constant 1 : index
    %c0_73 = arith.constant 0 : index
    %c0_74 = arith.constant 0 : index
    %160 = vector.load %arg5[%c1_72, %c0_73, %c0_74] : memref<2x1x96xf32, #tpu.memory_space<vmem>>, vector<1x1x96xf32>
    %161 = vector.shape_cast %160 : vector<1x1x96xf32> to vector<1x96xf32>
    %162 = vector.broadcast %161 : vector<1x96xf32> to vector<16x96xf32>
    %163 = arith.addf %159, %162 : vector<16x96xf32>
    %164 = arith.truncf %163 : vector<16x96xf32> to vector<16x96xbf16>
    %165 = vector.extract_strided_slice %164 {offsets = [0, 0], sizes = [16, 32], strides = [1, 1]} : vector<16x96xbf16> to vector<16x32xbf16>
    %166 = vector.shape_cast %165 : vector<16x32xbf16> to vector<2x8x2x16xbf16>
    %167 = tpu.transpose %166, [0, 2, 1, 3] : vector<2x8x2x16xbf16> -> vector<2x2x8x16xbf16>
    %168 = vector.shape_cast %167 : vector<2x2x8x16xbf16> to vector<4x8x16xbf16>
    %169 = vector.extract_strided_slice %164 {offsets = [0, 32], sizes = [16, 32], strides = [1, 1]} : vector<16x96xbf16> to vector<16x32xbf16>
    %170 = vector.shape_cast %169 : vector<16x32xbf16> to vector<2x8x2x16xbf16>
    %171 = tpu.transpose %170, [0, 2, 1, 3] : vector<2x8x2x16xbf16> -> vector<2x2x8x16xbf16>
    %172 = vector.shape_cast %171 : vector<2x2x8x16xbf16> to vector<4x8x16xbf16>
    %173 = vector.extract_strided_slice %164 {offsets = [0, 64], sizes = [16, 32], strides = [1, 1]} : vector<16x96xbf16> to vector<16x32xbf16>
    %174 = vector.shape_cast %173 : vector<16x32xbf16> to vector<2x8x2x16xbf16>
    %175 = tpu.transpose %174, [0, 2, 1, 3] : vector<2x8x2x16xbf16> -> vector<2x2x8x16xbf16>
    %176 = vector.shape_cast %175 : vector<2x2x8x16xbf16> to vector<4x8x16xbf16>
    "tpu.trace_start"() <{level = 10 : i32, message = "gqe,gke->gqk"}> : () -> ()
    %cst_75 = arith.constant dense<0.000000e+00> : vector<4x8x8xf32>
    %177 = tpu.matmul %168, %172, %cst_75 {dimension_numbers = #tpu.dot_dimension_numbers<[2], [2], [1], [1], [0, 0, 0, 1, 1, 1], [0], [0]>} : vector<4x8x16xbf16>, vector<4x8x16xbf16>, vector<4x8x8xf32> -> vector<4x8x8xf32>
    "tpu.trace_stop"() : () -> ()
    %cst_76 = arith.constant 2.500000e-01 : f32
    %178 = vector.broadcast %cst_76 : f32 to vector<4x8x8xf32>
    %179 = arith.mulf %177, %178 : vector<4x8x8xf32>
    %cst_77 = arith.constant dense<0xFF800000> : vector<4x8xf32>
    %180 = vector.multi_reduction <maximumf>, %179, %cst_77 [2] : vector<4x8x8xf32> to vector<4x8xf32>
    %181 = vector.shape_cast %180 : vector<4x8xf32> to vector<4x8x1xf32>
    %182 = vector.broadcast %181 : vector<4x8x1xf32> to vector<4x8x8xf32>
    %183 = arith.subf %179, %182 : vector<4x8x8xf32>
    %184 = math.exp %183 : vector<4x8x8xf32>
    %cst_78 = arith.constant dense<0.000000e+00> : vector<4x8xf32>
    %185 = vector.multi_reduction <add>, %184, %cst_78 [2] : vector<4x8x8xf32> to vector<4x8xf32>
    %186 = vector.shape_cast %185 : vector<4x8xf32> to vector<4x8x1xf32>
    %187 = tpu.reciprocal %186 {approx = true} : vector<4x8x1xf32> -> vector<4x8x1xf32>
    %188 = vector.broadcast %187 : vector<4x8x1xf32> to vector<4x8x8xf32>
    %189 = arith.mulf %184, %188 : vector<4x8x8xf32>
    %190 = arith.truncf %189 : vector<4x8x8xf32> to vector<4x8x8xbf16>
    "tpu.trace_start"() <{level = 10 : i32, message = "gqk,gke->gqe"}> : () -> ()
    %cst_79 = arith.constant dense<0.000000e+00> : vector<4x8x16xf32>
    %191 = tpu.matmul %190, %176, %cst_79 {dimension_numbers = #tpu.dot_dimension_numbers<[2], [1], [1], [2], [0, 0, 0, 1, 1, 2], [0], [0]>} : vector<4x8x8xbf16>, vector<4x8x16xbf16>, vector<4x8x16xf32> -> vector<4x8x16xf32>
    "tpu.trace_stop"() : () -> ()
    %192 = vector.shape_cast %191 : vector<4x8x16xf32> to vector<2x2x8x16xf32>
    %193 = tpu.transpose %192, [0, 2, 1, 3] : vector<2x2x8x16xf32> -> vector<2x8x2x16xf32>
    %194 = vector.shape_cast %193 : vector<2x8x2x16xf32> to vector<16x32xf32>
    %195 = arith.truncf %194 : vector<16x32xf32> to vector<16x32xbf16>
    %c1_80 = arith.constant 1 : index
    %c0_81 = arith.constant 0 : index
    %c0_82 = arith.constant 0 : index
    %196 = vector.load %arg6[%c1_80, %c0_81, %c0_82] : memref<2x32x32xbf16, #tpu.memory_space<vmem>>, vector<1x32x32xbf16>
    %197 = vector.shape_cast %196 : vector<1x32x32xbf16> to vector<32x32xbf16>
    %cst_83 = arith.constant dense<0.000000e+00> : vector<16x32xf32>
    %198 = tpu.matmul %195, %197, %cst_83 {dimension_numbers = #tpu.dot_dimension_numbers<[1], [0], [0], [1], [0, 0, 1, 1], [], []>} : vector<16x32xbf16>, vector<32x32xbf16>, vector<16x32xf32> -> vector<16x32xf32>
    %c1_84 = arith.constant 1 : index
    %c0_85 = arith.constant 0 : index
    %c0_86 = arith.constant 0 : index
    %199 = vector.load %arg7[%c1_84, %c0_85, %c0_86] : memref<2x1x32xf32, #tpu.memory_space<vmem>>, vector<1x1x32xf32>
    %200 = vector.shape_cast %199 : vector<1x1x32xf32> to vector<1x32xf32>
    %201 = vector.broadcast %200 : vector<1x32xf32> to vector<16x32xf32>
    %202 = arith.addf %198, %201 : vector<16x32xf32>
    %203 = arith.addf %155, %202 : vector<16x32xf32>
    %c1_87 = arith.constant 1 : index
    %c0_88 = arith.constant 0 : index
    %c0_89 = arith.constant 0 : index
    %204 = vector.load %arg8[%c1_87, %c0_88, %c0_89] : memref<2x1x32xf32, #tpu.memory_space<vmem>>, vector<1x1x32xf32>
    %205 = vector.shape_cast %204 : vector<1x1x32xf32> to vector<1x32xf32>
    %c1_90 = arith.constant 1 : index
    %c0_91 = arith.constant 0 : index
    %c0_92 = arith.constant 0 : index
    %206 = vector.load %arg9[%c1_90, %c0_91, %c0_92] : memref<2x1x32xf32, #tpu.memory_space<vmem>>, vector<1x1x32xf32>
    %207 = vector.shape_cast %206 : vector<1x1x32xf32> to vector<1x32xf32>
    %cst_93 = arith.constant dense<0.000000e+00> : vector<16xf32>
    %208 = vector.multi_reduction <add>, %203, %cst_93 [1] : vector<16x32xf32> to vector<16xf32>
    %209 = vector.shape_cast %208 : vector<16xf32> to vector<16x1xf32>
    %cst_94 = arith.constant 3.200000e+01 : f32
    %210 = vector.broadcast %cst_94 : f32 to vector<16x1xf32>
    %211 = arith.divf %209, %210 : vector<16x1xf32>
    %212 = vector.broadcast %211 : vector<16x1xf32> to vector<16x32xf32>
    %213 = arith.subf %203, %212 : vector<16x32xf32>
    %214 = arith.mulf %213, %213 : vector<16x32xf32>
    %cst_95 = arith.constant dense<0.000000e+00> : vector<16xf32>
    %215 = vector.multi_reduction <add>, %214, %cst_95 [1] : vector<16x32xf32> to vector<16xf32>
    %216 = vector.shape_cast %215 : vector<16xf32> to vector<16x1xf32>
    %cst_96 = arith.constant 3.200000e+01 : f32
    %217 = vector.broadcast %cst_96 : f32 to vector<16x1xf32>
    %218 = arith.divf %216, %217 : vector<16x1xf32>
    %219 = vector.broadcast %211 : vector<16x1xf32> to vector<16x32xf32>
    %220 = arith.subf %203, %219 : vector<16x32xf32>
    %cst_97 = arith.constant 9.99999996E-13 : f32
    %221 = vector.broadcast %cst_97 : f32 to vector<16x1xf32>
    %222 = arith.addf %218, %221 : vector<16x1xf32>
    %223 = math.rsqrt %222 : vector<16x1xf32>
    %224 = vector.broadcast %223 : vector<16x1xf32> to vector<16x32xf32>
    %225 = arith.mulf %220, %224 : vector<16x32xf32>
    %226 = vector.broadcast %205 : vector<1x32xf32> to vector<16x32xf32>
    %227 = arith.mulf %225, %226 : vector<16x32xf32>
    %228 = vector.broadcast %207 : vector<1x32xf32> to vector<16x32xf32>
    %229 = arith.addf %227, %228 : vector<16x32xf32>
    %230 = arith.truncf %229 : vector<16x32xf32> to vector<16x32xbf16>
    %c1_98 = arith.constant 1 : index
    %c0_99 = arith.constant 0 : index
    %c0_100 = arith.constant 0 : index
    %231 = vector.load %arg10[%c1_98, %c0_99, %c0_100] : memref<2x32x64xbf16, #tpu.memory_space<vmem>>, vector<1x32x64xbf16>
    %232 = vector.shape_cast %231 : vector<1x32x64xbf16> to vector<32x64xbf16>
    %cst_101 = arith.constant dense<0.000000e+00> : vector<16x64xf32>
    %233 = tpu.matmul %230, %232, %cst_101 {dimension_numbers = #tpu.dot_dimension_numbers<[1], [0], [0], [1], [0, 0, 1, 1], [], []>} : vector<16x32xbf16>, vector<32x64xbf16>, vector<16x64xf32> -> vector<16x64xf32>
    %c1_102 = arith.constant 1 : index
    %c0_103 = arith.constant 0 : index
    %c0_104 = arith.constant 0 : index
    %234 = vector.load %arg11[%c1_102, %c0_103, %c0_104] : memref<2x1x64xf32, #tpu.memory_space<vmem>>, vector<1x1x64xf32>
    %235 = vector.shape_cast %234 : vector<1x1x64xf32> to vector<1x64xf32>
    %236 = vector.broadcast %235 : vector<1x64xf32> to vector<16x64xf32>
    %237 = arith.addf %233, %236 : vector<16x64xf32>
    %238 = arith.mulf %237, %237 : vector<16x64xf32>
    %239 = arith.mulf %237, %238 : vector<16x64xf32>
    %cst_105 = arith.constant 4.471500e-02 : f32
    %240 = vector.broadcast %cst_105 : f32 to vector<16x64xf32>
    %241 = arith.mulf %240, %239 : vector<16x64xf32>
    %242 = arith.addf %237, %241 : vector<16x64xf32>
    %cst_106 = arith.constant 0.797884583 : f32
    %243 = vector.broadcast %cst_106 : f32 to vector<16x64xf32>
    %244 = arith.mulf %243, %242 : vector<16x64xf32>
    %245 = math.tanh %244 : vector<16x64xf32>
    %cst_107 = arith.constant 1.000000e+00 : f32
    %246 = vector.broadcast %cst_107 : f32 to vector<16x64xf32>
    %247 = arith.addf %246, %245 : vector<16x64xf32>
    %cst_108 = arith.constant 5.000000e-01 : f32
    %248 = vector.broadcast %cst_108 : f32 to vector<16x64xf32>
    %249 = arith.mulf %248, %247 : vector<16x64xf32>
    %250 = arith.mulf %237, %249 : vector<16x64xf32>
    %251 = arith.truncf %250 : vector<16x64xf32> to vector<16x64xbf16>
    %c1_109 = arith.constant 1 : index
    %c0_110 = arith.constant 0 : index
    %c0_111 = arith.constant 0 : index
    %252 = vector.load %arg12[%c1_109, %c0_110, %c0_111] : memref<2x64x32xbf16, #tpu.memory_space<vmem>>, vector<1x64x32xbf16>
    %253 = vector.shape_cast %252 : vector<1x64x32xbf16> to vector<64x32xbf16>
    %cst_112 = arith.constant dense<0.000000e+00> : vector<16x32xf32>
    %254 = tpu.matmul %251, %253, %cst_112 {dimension_numbers = #tpu.dot_dimension_numbers<[1], [0], [0], [1], [0, 0, 1, 1], [], []>} : vector<16x64xbf16>, vector<64x32xbf16>, vector<16x32xf32> -> vector<16x32xf32>
    %c1_113 = arith.constant 1 : index
    %c0_114 = arith.constant 0 : index
    %c0_115 = arith.constant 0 : index
    %255 = vector.load %arg13[%c1_113, %c0_114, %c0_115] : memref<2x1x32xf32, #tpu.memory_space<vmem>>, vector<1x1x32xf32>
    %256 = vector.shape_cast %255 : vector<1x1x32xf32> to vector<1x32xf32>
    %257 = vector.broadcast %256 : vector<1x32xf32> to vector<16x32xf32>
    %258 = arith.addf %254, %257 : vector<16x32xf32>
    %259 = arith.addf %229, %258 : vector<16x32xf32>
    %c1_116 = arith.constant 1 : index
    %c0_117 = arith.constant 0 : index
    %c0_118 = arith.constant 0 : index
    %260 = vector.load %arg14[%c1_116, %c0_117, %c0_118] : memref<2x1x32xf32, #tpu.memory_space<vmem>>, vector<1x1x32xf32>
    %261 = vector.shape_cast %260 : vector<1x1x32xf32> to vector<1x32xf32>
    %c1_119 = arith.constant 1 : index
    %c0_120 = arith.constant 0 : index
    %c0_121 = arith.constant 0 : index
    %262 = vector.load %arg15[%c1_119, %c0_120, %c0_121] : memref<2x1x32xf32, #tpu.memory_space<vmem>>, vector<1x1x32xf32>
    %263 = vector.shape_cast %262 : vector<1x1x32xf32> to vector<1x32xf32>
    %cst_122 = arith.constant dense<0.000000e+00> : vector<16xf32>
    %264 = vector.multi_reduction <add>, %259, %cst_122 [1] : vector<16x32xf32> to vector<16xf32>
    %265 = vector.shape_cast %264 : vector<16xf32> to vector<16x1xf32>
    %cst_123 = arith.constant 3.200000e+01 : f32
    %266 = vector.broadcast %cst_123 : f32 to vector<16x1xf32>
    %267 = arith.divf %265, %266 : vector<16x1xf32>
    %268 = vector.broadcast %267 : vector<16x1xf32> to vector<16x32xf32>
    %269 = arith.subf %259, %268 : vector<16x32xf32>
    %270 = arith.mulf %269, %269 : vector<16x32xf32>
    %cst_124 = arith.constant dense<0.000000e+00> : vector<16xf32>
    %271 = vector.multi_reduction <add>, %270, %cst_124 [1] : vector<16x32xf32> to vector<16xf32>
    %272 = vector.shape_cast %271 : vector<16xf32> to vector<16x1xf32>
    %cst_125 = arith.constant 3.200000e+01 : f32
    %273 = vector.broadcast %cst_125 : f32 to vector<16x1xf32>
    %274 = arith.divf %272, %273 : vector<16x1xf32>
    %275 = vector.broadcast %267 : vector<16x1xf32> to vector<16x32xf32>
    %276 = arith.subf %259, %275 : vector<16x32xf32>
    %cst_126 = arith.constant 9.99999996E-13 : f32
    %277 = vector.broadcast %cst_126 : f32 to vector<16x1xf32>
    %278 = arith.addf %274, %277 : vector<16x1xf32>
    %279 = math.rsqrt %278 : vector<16x1xf32>
    %280 = vector.broadcast %279 : vector<16x1xf32> to vector<16x32xf32>
    %281 = arith.mulf %276, %280 : vector<16x32xf32>
    %282 = vector.broadcast %261 : vector<1x32xf32> to vector<16x32xf32>
    %283 = arith.mulf %281, %282 : vector<16x32xf32>
    %284 = vector.broadcast %263 : vector<1x32xf32> to vector<16x32xf32>
    %285 = arith.addf %283, %284 : vector<16x32xf32>
    %286 = vector.shape_cast %285 : vector<16x32xf32> to vector<2x8x32xf32>
    %287 = vector.extract_strided_slice %286 {offsets = [0, 0, 0], sizes = [2, 1, 32], strides = [1, 1, 1]} : vector<2x8x32xf32> to vector<2x1x32xf32>
    %288 = vector.shape_cast %287 : vector<2x1x32xf32> to vector<2x32xf32>
    %289 = arith.truncf %288 : vector<2x32xf32> to vector<2x32xbf16>
    %c0_127 = arith.constant 0 : index
    %c0_128 = arith.constant 0 : index
    %290 = vector.load %arg16[%c0_127, %c0_128] : memref<32x128xbf16, #tpu.memory_space<vmem>>, vector<32x128xbf16>
    %cst_129 = arith.constant dense<0.000000e+00> : vector<2x128xf32>
    %291 = tpu.matmul %289, %290, %cst_129 {dimension_numbers = #tpu.dot_dimension_numbers<[1], [0], [0], [1], [0, 0, 1, 1], [], []>} : vector<2x32xbf16>, vector<32x128xbf16>, vector<2x128xf32> -> vector<2x128xf32>
    %c0_130 = arith.constant 0 : index
    %c0_131 = arith.constant 0 : index
    %292 = vector.load %arg17[%c0_130, %c0_131] : memref<1x128xf32, #tpu.memory_space<vmem>>, vector<1x128xf32>
    %293 = vector.broadcast %292 : vector<1x128xf32> to vector<2x128xf32>
    %294 = arith.addf %291, %293 : vector<2x128xf32>
    %295 = vector.shape_cast %294 : vector<2x128xf32> to vector<2x1x128xf32>
    %c0_132 = arith.constant 0 : index
    %c0_133 = arith.constant 0 : index
    %c0_134 = arith.constant 0 : index
    %296 = vector.load %arg18[%c0_132, %c0_133, %c0_134] : memref<2x1x128xf32, #tpu.memory_space<vmem>>, vector<2x1x128xf32>
    tpu.vector_store %arg18[%c0_132, %c0_133, %c0_134], %295 {strides = array<i32>} : memref<2x1x128xf32, #tpu.memory_space<vmem>>, vector<2x1x128xf32>,
    return
  }
  func.func @transform_0(%arg0: i32) -> (i32, i32, i32) {
    %c0_i32 = arith.constant 0 : i32
    %c0_i32_0 = arith.constant 0 : i32
    %c0_i32_1 = arith.constant 0 : i32
    return %arg0, %c0_i32, %c0_i32_0 : i32, i32, i32
  }
  func.func @transform_1(%arg0: i32) -> (i32, i32) {
    %c0_i32 = arith.constant 0 : i32
    %c0_i32_0 = arith.constant 0 : i32
    %c0_i32_1 = arith.constant 0 : i32
    return %c0_i32, %c0_i32_0 : i32, i32
  }
  func.func @transform_2(%arg0: i32) -> (i32, i32) {
    %c0_i32 = arith.constant 0 : i32
    %c0_i32_0 = arith.constant 0 : i32
    %c0_i32_1 = arith.constant 0 : i32
    return %c0_i32, %c0_i32_0 : i32, i32
  }
  func.func @transform_3(%arg0: i32) -> (i32, i32, i32) {
    %c0_i32 = arith.constant 0 : i32
    %c0_i32_0 = arith.constant 0 : i32
    %c0_i32_1 = arith.constant 0 : i32
    %c0_i32_2 = arith.constant 0 : i32
    return %c0_i32, %c0_i32_0, %c0_i32_1 : i32, i32, i32
  }
  func.func @transform_4(%arg0: i32) -> (i32, i32, i32) {
    %c0_i32 = arith.constant 0 : i32
    %c0_i32_0 = arith.constant 0 : i32
    %c0_i32_1 = arith.constant 0 : i32
    %c0_i32_2 = arith.constant 0 : i32
    return %c0_i32, %c0_i32_0, %c0_i32_1 : i32, i32, i32
  }
  func.func @transform_5(%arg0: i32) -> (i32, i32, i32) {
    %c0_i32 = arith.constant 0 : i32
    %c0_i32_0 = arith.constant 0 : i32
    %c0_i32_1 = arith.constant 0 : i32
    %c0_i32_2 = arith.constant 0 : i32
    return %c0_i32, %c0_i32_0, %c0_i32_1 : i32, i32, i32
  }
  func.func @transform_6(%arg0: i32) -> (i32, i32, i32) {
    %c0_i32 = arith.constant 0 : i32
    %c0_i32_0 = arith.constant 0 : i32
    %c0_i32_1 = arith.constant 0 : i32
    %c0_i32_2 = arith.constant 0 : i32
    return %c0_i32, %c0_i32_0, %c0_i32_1 : i32, i32, i32
  }
  func.func @transform_7(%arg0: i32) -> (i32, i32, i32) {
    %c0_i32 = arith.constant 0 : i32
    %c0_i32_0 = arith.constant 0 : i32
    %c0_i32_1 = arith.constant 0 : i32
    %c0_i32_2 = arith.constant 0 : i32
    return %c0_i32, %c0_i32_0, %c0_i32_1 : i32, i32, i32
  }
  func.func @transform_8(%arg0: i32) -> (i32, i32, i32) {
    %c0_i32 = arith.constant 0 : i32
    %c0_i32_0 = arith.constant 0 : i32
    %c0_i32_1 = arith.constant 0 : i32
    %c0_i32_2 = arith.constant 0 : i32
    return %c0_i32, %c0_i32_0, %c0_i32_1 : i32, i32, i32
  }
  func.func @transform_9(%arg0: i32) -> (i32, i32, i32) {
    %c0_i32 = arith.constant 0 : i32
    %c0_i32_0 = arith.constant 0 : i32
    %c0_i32_1 = arith.constant 0 : i32
    %c0_i32_2 = arith.constant 0 : i32
    return %c0_i32, %c0_i32_0, %c0_i32_1 : i32, i32, i32
  }
  func.func @transform_10(%arg0: i32) -> (i32, i32, i32) {
    %c0_i32 = arith.constant 0 : i32
    %c0_i32_0 = arith.constant 0 : i32
    %c0_i32_1 = arith.constant 0 : i32
    %c0_i32_2 = arith.constant 0 : i32
    return %c0_i32, %c0_i32_0, %c0_i32_1 : i32, i32, i32
  }
  func.func @transform_11(%arg0: i32) -> (i32, i32, i32) {
    %c0_i32 = arith.constant 0 : i32
    %c0_i32_0 = arith.constant 0 : i32
    %c0_i32_1 = arith.constant 0 : i32
    %c0_i32_2 = arith.constant 0 : i32
    return %c0_i32, %c0_i32_0, %c0_i32_1 : i32, i32, i32
  }
  func.func @transform_12(%arg0: i32) -> (i32, i32, i32) {
    %c0_i32 = arith.constant 0 : i32
    %c0_i32_0 = arith.constant 0 : i32
    %c0_i32_1 = arith.constant 0 : i32
    %c0_i32_2 = arith.constant 0 : i32
    return %c0_i32, %c0_i32_0, %c0_i32_1 : i32, i32, i32
  }
  func.func @transform_13(%arg0: i32) -> (i32, i32, i32) {
    %c0_i32 = arith.constant 0 : i32
    %c0_i32_0 = arith.constant 0 : i32
    %c0_i32_1 = arith.constant 0 : i32
    %c0_i32_2 = arith.constant 0 : i32
    return %c0_i32, %c0_i32_0, %c0_i32_1 : i32, i32, i32
  }
  func.func @transform_14(%arg0: i32) -> (i32, i32, i32) {
    %c0_i32 = arith.constant 0 : i32
    %c0_i32_0 = arith.constant 0 : i32
    %c0_i32_1 = arith.constant 0 : i32
    %c0_i32_2 = arith.constant 0 : i32
    return %c0_i32, %c0_i32_0, %c0_i32_1 : i32, i32, i32
  }
  func.func @transform_15(%arg0: i32) -> (i32, i32) {
    %c0_i32 = arith.constant 0 : i32
    %c0_i32_0 = arith.constant 0 : i32
    %c0_i32_1 = arith.constant 0 : i32
    return %c0_i32, %c0_i32_0 : i32, i32
  }
  func.func @transform_16(%arg0: i32) -> (i32, i32) {
    %c0_i32 = arith.constant 0 : i32
    %c0_i32_0 = arith.constant 0 : i32
    %c0_i32_1 = arith.constant 0 : i32
    return %c0_i32, %c0_i32_0 : i32, i32
  }
  func.func @transform_17(%arg0: i32) -> (i32, i32, i32) {
    %c0_i32 = arith.constant 0 : i32
    %c0_i32_0 = arith.constant 0 : i32
    %c0_i32_1 = arith.constant 0 : i32
    return %arg0, %c0_i32, %c0_i32_0 : i32, i32, i32
  }
}

</mosaic_0001>

<bundles_post_ra>
// kernel: next_sen_clf_forward.1
= control target key start
LH: loop header
LB: loop body
LE: loop exit
PB: predicated region body
PF: predicated region fallthrough
CT: control target
= control target key end

     0   :  { %s3856_s0 = inlined_call_operand.vmem [shape: f32[2,8,32], index: 0, kind: input, shape index: {}]   ;;  %s3857_s1 = inlined_call_operand.vmem [shape: f32[1,32], index: 1, kind: input, shape index: {}]   ;;  %s3858_s2 = inlined_call_operand.vmem [shape: f32[1,32], index: 2, kind: input, shape index: {}]   ;;  %s3859_s3 = inlined_call_operand.vmem [shape: bf16[2,32,96], index: 3, kind: input, shape index: {}]   ;;  %s3860_s4 = inlined_call_operand.vmem [shape: f32[2,1,96], index: 4, kind: input, shape index: {}]   ;;  %s3861_s5 = inlined_call_operand.vmem [shape: bf16[2,32,32], index: 5, kind: input, shape index: {}]   ;;  %s3862_s6 = inlined_call_operand.vmem [shape: f32[2,1,32], index: 6, kind: input, shape index: {}]   ;;  %s3863_s7 = inlined_call_operand.vmem [shape: f32[2,1,32], index: 7, kind: input, shape index: {}]   ;;  %s3864_s8 = inlined_call_operand.vmem [shape: f32[2,1,32], index: 8, kind: input, shape index: {}]   ;;  %s3865_s9 = inlined_call_operand.vmem [shape: bf16[2,32,64], index: 9, kind: input, shape index: {}]   ;;  %s3866_s10 = inlined_call_operand.vmem [shape: f32[2,1,64], index: 10, kind: input, shape index: {}]   ;;  %s3867_s11 = inlined_call_operand.vmem [shape: bf16[2,64,32], index: 11, kind: input, shape index: {}]   ;;  %s3868_s12 = inlined_call_operand.vmem [shape: f32[2,1,32], index: 12, kind: input, shape index: {}]   ;;  %s3869_s13 = inlined_call_operand.vmem [shape: f32[2,1,32], index: 13, kind: input, shape index: {}]   ;;  %s3870_s14 = inlined_call_operand.vmem [shape: f32[2,1,32], index: 14, kind: input, shape index: {}]   ;;  %s3871_s15 = inlined_call_operand.vmem [shape: bf16[32,128], index: 15, kind: input, shape index: {}]   ;;  %s3872_s16 = inlined_call_operand.vmem [shape: f32[1,128], index: 16, kind: input, shape index: {}]   ;;  %s3873_s17 = inlined_call_operand.hbm [shape: f32[2,1,128], index: 17, kind: output, shape index: {}]  }
   0x1   :  { %3875 = sst [smem:[#allocation5_spill]] %s3856_s0 }
   0x2   :  { %3876 = sst [smem:[#allocation6_spill]] %s3857_s1 }
   0x3   :  { %s3877_s26 = sld [smem:[#allocation5_spill]]  ;;  %vm62_vm0 = vcmask 261120  }
   0x9   :  { %v58_v0 = vld [vmem:[%s3877_s26] sm:$0xff]  ;;  %v59_v2 = vld [vmem:[%s3877_s26 + $0x8] sm:$0xff] }
   0xa   :  { %v63_v1 = vsel %vm62_vm0, %v58_v0, 0.0  ;;  %v66_v3 = vsel %vm62_vm0, %v59_v2, 0.0 }
   0xb   :  { %64 = vadd.xlane.f32.xlu0 %v63_v1 }
   0xc   :  { %22 = vsyncpa [#allocation3], 0  ;;  %v2948_v4 = vmov 32.0   ;;  %v2801_v21 = vld [vmem:[%s3859_s3 + $0x8] sm:$0xff]  ;;  %v2800_v23 = vld [vmem:[%s3859_s3] sm:$0xff]  ;;  %s3878_s20 = sld [smem:[#allocation6_spill]] }
   0xd   :  { %2860 = vrcp.f32 %v2948_v4  ;;  %154 = vmatpush.bf16.msra.mxu0 %v2801_v21  ;;  %v2842_v47 = vld [vmem:[%s3858_s2] ss:$0 sm:$0xff]  ;;  %s2949_s25 = smov 96   ;;  %s2950_s2 = smov 112   ;;  %v2952_v61 = vmov 1983009808  }
   0xe   :  { %v2843_v52 = vld [vmem:[%s3860_s4] ss:$0 sm:$0xff]  ;;  %s2951_s26 = smov 64   ;;  %v184_v62 = vunpack.c.l.s4 %v2952_v61  ;;  %vm188_vm8 = vcmask 1047556   ;;  %vm691_vm9 = vcmask 130048   ;;  %vm772_vm10 = vcmask 64512  }
   0xf   :  { %vm824_vm11 = vcmask 1043456   ;;  %s2954_s29 = smov 16   ;;  %s2955_s30 = smov [#allocation2]  }
  0x10   :  { %v3103_v1 = vunpack.c.0.s8 %v184_v62  ;;  %s2645_s18 = sshll.u32 %s2955_s30, 4  ;;  %s2956_s19 = smov 1   ;;  %s2646_s18 = int_to_ptr.vmem [resolvable:$true] %s2645_s18 }
  0x11   :  { %155 = vmatpush.bf16.msra.mxu0 %v2800_v23 }
  0x12   :  { %v2841_v42 = vld [vmem:[%s3878_s20] ss:$0 sm:$0xff] }
  0x13   :  { %67 = vadd.xlane.f32.xlu0 %v66_v3  ;;  %v2861_v5 = vpop.eup %2860 }
  0x14   :  { %v70_v6 = vmul.f32 32.0, %v2861_v5  ;;  %vm74_vm1 = vweird.f32 %v2861_v5 }
  0x16   :  { %v71_v7 = vsub.f32 1.0, %v70_v6 }
  0x18   :  { %v72_v8 = vmul.f32 %v2861_v5, %v71_v7 }
  0x1a   :  { %v73_v9 = vadd.f32 %v2861_v5, %v72_v8  ;;  %v2953_v8 = vmov 1934713408  }
  0x1c   :  { %v3055_v10 = vsel %vm74_vm1, %v2861_v5, %v73_v9  ;;  %v191_v9 = vunpack.c.l.s4 %v2953_v8 }
  0x7e   :  { %v65_v11 = vpop.xlane.xlu0 %64 }
  0x7f   :  { %v76_v12 = vmul.f32 %v3055_v10, %v65_v11 }
  0x81   :  { %v78_v13 = vsub.f32 %v58_v0, %v76_v12 }
  0x83   :  { %v80_v14 = vmul.f32 %v78_v13, %v78_v13 }
  0x85   :  { %v82_v15 = vsel %vm62_vm0, %v80_v14, 0.0  ;;  %v3111_v14 = vunpack.c.0.s8 %v191_v9 }
  0x86   :  { %83 = vadd.xlane.f32.xlu1 %v82_v15  ;;  %v68_v16 = vpop.xlane.xlu0 %67 }
  0x87   :  { %v77_v17 = vmul.f32 %v3055_v10, %v68_v16 }
  0x89   :  { %v79_v18 = vsub.f32 %v59_v2, %v77_v17 }
  0x8b   :  { %v81_v19 = vmul.f32 %v79_v18, %v79_v18 }
  0x8d   :  { %v85_v20 = vsel %vm62_vm0, %v81_v19, 0.0 }
  0x8e   :  { %86 = vadd.xlane.f32.xlu1 %v85_v20 }
  0xf9   :  { %v84_v22 = vpop.xlane.xlu1 %83 }
  0xfa   :  { %v88_v24 = vmul.f32 %v84_v22, %v3055_v10 }
  0xfc   :  { %v90_v25 = vadd.f32 1e-12, %v88_v24 }
  0xfe   :  { %2862 = vrsqrt.f32 %v90_v25  ;;  %vm98_vm3 = vweird.f32 %v90_v25 }
 0x101   :  { %v87_v26 = vpop.xlane.xlu1 %86 }
 0x102   :  { %v89_v27 = vmul.f32 %v87_v26, %v3055_v10 }
 0x104   :  { %v2863_v28 = vpop.eup %2862  ;;  %v91_v29 = vadd.f32 1e-12, %v89_v27 }
 0x105   :  { %v93_v30 = vmul.f32 %v2863_v28, %v90_v25  ;;  %vm99_vm2 = vweird.f32 %v2863_v28 }
 0x106   :  { %2864 = vrsqrt.f32 %v91_v29  ;;  %vm100_vm4 = vmor %vm98_vm3, %vm99_vm2  ;;  %vm108_vm6 = vweird.f32 %v91_v29  ;;  %vm1278_vm3 = vcmask 523264  }
 0x107   :  { %v94_v31 = vmul.f32 %v2863_v28, %v93_v30 }
 0x109   :  { %v95_v32 = vmul.f32 0.5, %v94_v31 }
 0x10b   :  { %v96_v33 = vsub.f32 1.5, %v95_v32 }
 0x10c   :  { %v2865_v34 = vpop.eup %2864 }
 0x10d   :  { %v97_v35 = vmul.f32 %v2863_v28, %v96_v33  ;;  %v103_v36 = vmul.f32 %v2865_v34, %v91_v29  ;;  %vm109_vm5 = vweird.f32 %v2865_v34 }
 0x10e   :  { %vm110_vm7 = vmor %vm108_vm6, %vm109_vm5 }
 0x10f   :  { %v104_v37 = vmul.f32 %v2865_v34, %v103_v36  ;;  %v101_v38 = vsel %vm100_vm4, %v2863_v28, %v97_v35 }
 0x110   :  { %v112_v41 = vmul.f32 %v101_v38, %v78_v13 }
 0x111   :  { %v105_v39 = vmul.f32 0.5, %v104_v37 }
 0x112   :  { %v117_v46 = vmul.f32 %v2841_v42, %v112_v41 }
 0x113   :  { %v106_v40 = vsub.f32 1.5, %v105_v39 }
 0x114   :  { %v3075_v49 = vadd.f32 %v2842_v47, %v117_v46 }
 0x115   :  { %v107_v43 = vmul.f32 %v2865_v34, %v106_v40 }
 0x117   :  { %v111_v44 = vsel %vm110_vm7, %v2865_v34, %v107_v43 }
 0x118   :  { %v113_v45 = vmul.f32 %v111_v44, %v79_v18 }
 0x11a   :  { %v118_v48 = vmul.f32 %v2841_v42, %v113_v45 }
 0x11c   :  { %v3077_v50 = vadd.f32 %v2842_v47, %v118_v48 }
 0x11e   :  { %v124_v51 = vpack.c.bf16 %v3077_v50, %v3075_v49 }
 0x120   :  { %2667 = vmatmul.msk.bf16.vlgmr.msra.gmra.mxu0 %vm62_vm0, %v124_v51 }
 0x19d   :  { %v157_v53 = vpop.f32.mrf.mxu0 }
 0x19e   :  { %v158_v54 = vadd.f32 %v2843_v52, %v157_v53 }
 0x1a0   :  { %v162_v55 = vpack.c.bf16 %v158_v54, %v158_v54 }
 0x1a2   :  { %339 = vrot.lane.b32.xlu0 %v162_v55, %s2949_s25  ;;  %166 = vrot.lane.b32.xlu2 %v162_v55, %s2950_s2  ;;  %v173_v0 = vshrl.u32 %v162_v55, 16 }
 0x1a5   :  { %v159_v56 = vpop.f32.mrf.mxu0 }
 0x1a6   :  { %v160_v57 = vadd.f32 %v2843_v52, %v159_v56 }
 0x1a8   :  { %v3087_v58 = vpack.c.bf16 %v160_v57, %v160_v57 }
 0x1aa   :  { %341 = vrot.lane.b32.xlu1 %v3087_v58, %s2949_s25  ;;  %515 = vrot.lane.b32.xlu0 %v162_v55, %s2951_s26  ;;  %v179_v15 = vshrl.u32 %v3087_v58, 16 }
 0x1ab   :  { %168 = vrot.lane.b32.xlu2 %v3087_v58, %s2950_s2 }
 0x1fc   :  { %v3094_v59 = vpop.permute.xlu2 %166 }
 0x1fd   :  { %343 = vrot.lane.b32.xlu2 %v3094_v59, %s2949_s25  ;;  %v174_v63 = vshrl.u32 %v3094_v59, 16  ;;  %v172_v2 = vpack.i.b16 %v3094_v59, %v162_v55 }
 0x1ff   :  { %v175_v3 = vpack.i.b16 %v174_v63, %v173_v0  ;;  %v186_v4 = vperm.slane %v172_v2, %v3103_v1 }
 0x201   :  { %v206_v5 = vperm.slane %v175_v3, %v3103_v1  ;;  %v187_v6 = vrot.slane %v186_v4, 4  ;;  %v193_v24 = vperm.slane %v186_v4, %v3111_v14 }
 0x203   :  { %v207_v7 = vrot.slane %v206_v5, 4  ;;  %v189_v11 = vsel %vm188_vm8, 0, %v187_v6  ;;  %v212_v25 = vperm.slane %v206_v5, %v3111_v14  ;;  %v198_v30 = vrot.slane %v193_v24, 4 }
 0x204   :  { %v197_v16 = vperm.slane %v189_v11, %v3111_v14 }
 0x205   :  { %v3098_v60 = vpop.permute.xlu2 %168  ;;  %v208_v12 = vsel %vm188_vm8, 0, %v207_v7  ;;  %v217_v31 = vrot.slane %v212_v25, 4  ;;  %v199_v37 = vsel %vm188_vm8, 0, %v198_v30 }
 0x206   :  { %345 = vrot.lane.b32.xlu2 %v3098_v60, %s2949_s25  ;;  %v180_v13 = vshrl.u32 %v3098_v60, 16  ;;  %v216_v17 = vperm.slane %v208_v12, %v3111_v14  ;;  %v178_v18 = vpack.i.b16 %v3098_v60, %v3087_v58  ;;  %v200_v20 = vrot.slane %v197_v16, 4 }
 0x207   :  { %v218_v38 = vsel %vm188_vm8, 0, %v217_v31 }
 0x208   :  { %v181_v19 = vpack.i.b16 %v180_v13, %v179_v15  ;;  %v219_v21 = vrot.slane %v216_v17, 4  ;;  %v225_v22 = vperm.slane %v178_v18, %v3103_v1  ;;  %v201_v26 = vsel %vm188_vm8, 0, %v200_v20 }
 0x209   :  { %v264_v32 = vrot.slane %v201_v26, 4  ;;  %v259_v53 = vsel %vm188_vm8, %v200_v20, %v193_v24 }
 0x20a   :  { %v244_v23 = vperm.slane %v181_v19, %v3103_v1  ;;  %v220_v27 = vsel %vm188_vm8, 0, %v219_v21  ;;  %v226_v28 = vrot.slane %v225_v22, 4  ;;  %v3133_v47 = vperm.slane %v225_v22, %v3111_v14 }
 0x20b   :  { %v281_v33 = vrot.slane %v220_v27, 4  ;;  %v265_v41 = vsel %vm188_vm8, %v264_v32, %v199_v37  ;;  %v276_v56 = vsel %vm188_vm8, %v219_v21, %v212_v25  ;;  %v263_v5 = vperm.slane %v259_v53, %v3103_v1 }
 0x20c   :  { %v245_v29 = vrot.slane %v244_v23, 4  ;;  %v227_v34 = vsel %vm188_vm8, 0, %v226_v28  ;;  %v3136_v48 = vperm.slane %v244_v23, %v3111_v14  ;;  %v269_v54 = vperm.slane %v265_v41, %v3103_v1 }
 0x20d   :  { %v235_v39 = vperm.slane %v227_v34, %v3111_v14  ;;  %v282_v42 = vsel %vm188_vm8, %v281_v33, %v218_v38  ;;  %v236_v2 = vrot.slane %v3133_v47, 4  ;;  %v280_v13 = vperm.slane %v276_v56, %v3103_v1 }
 0x20e   :  { %v246_v35 = vsel %vm188_vm8, 0, %v245_v29  ;;  %v286_v57 = vperm.slane %v282_v42, %v3103_v1  ;;  %v255_v3 = vrot.slane %v3136_v48, 4  ;;  %v270_v9 = vrot.slane %v269_v54, 4 }
 0x20f   :  { %v254_v43 = vperm.slane %v246_v35, %v3111_v14  ;;  %v3141_v55 = vrot.slane %v235_v39, 4  ;;  %v237_v25 = vsel %vm188_vm8, 0, %v236_v2 }
 0x210   :  { %v287_v15 = vrot.slane %v286_v57, 4  ;;  %v3164_v27 = vsel %vm188_vm8, %v270_v9, %v263_v5  ;;  %v256_v28 = vsel %vm188_vm8, 0, %v255_v3 }
 0x211   :  { %v3145_v61 = vrot.slane %v254_v43, 4  ;;  %v239_v11 = vsel %vm188_vm8, 0, %v3141_v55 }
 0x212   :  { %v298_v33 = vrot.slane %v239_v11, 4  ;;  %v288_v35 = vsel %vm188_vm8, %v287_v15, %v280_v13 }
 0x213   :  { %v258_v16 = vsel %vm188_vm8, 0, %v3145_v61 }
 0x214   :  { %v340_v36 = vpop.permute.xlu0 %339 }
 0x215   :  { %v350_v44 = vshrl.u32 %v340_v36, 16 }
 0x21c   :  { %v342_v4 = vpop.permute.xlu1 %341 }
 0x21d   :  { %v356_v17 = vshrl.u32 %v342_v4, 16 }
 0x257   :  { %v344_v40 = vpop.permute.xlu2 %343 }
 0x258   :  { %v349_v45 = vpack.i.b16 %v344_v40, %v340_v36  ;;  %v351_v46 = vshrl.u32 %v344_v40, 16  ;;  %v315_v36 = vrot.slane %v258_v16, 4  ;;  %v299_v16 = vsel %vm188_vm8, %v298_v33, %v237_v25 }
 0x25a   :  { %v352_v51 = vpack.i.b16 %v351_v46, %v350_v44  ;;  %v363_v52 = vperm.slane %v349_v45, %v3103_v1  ;;  %v316_v2 = vsel %vm188_vm8, %v315_v36, %v256_v28  ;;  %v303_v36 = vperm.slane %v299_v16, %v3103_v1 }
 0x25c   :  { %v364_v62 = vrot.slane %v363_v52, 4  ;;  %v369_v63 = vperm.slane %v363_v52, %v3111_v14  ;;  %v382_v0 = vperm.slane %v352_v51, %v3103_v1 }
 0x25e   :  { %v365_v6 = vsel %vm188_vm8, 0, %v364_v62  ;;  %v383_v7 = vrot.slane %v382_v0, 4  ;;  %v388_v8 = vperm.slane %v382_v0, %v3111_v14  ;;  %v374_v18 = vrot.slane %v369_v63, 4 }
 0x25f   :  { %v373_v12 = vperm.slane %v365_v6, %v3111_v14 }
 0x260   :  { %v384_v19 = vsel %vm188_vm8, 0, %v383_v7  ;;  %v346_v20 = vpop.permute.xlu2 %345  ;;  %v393_v26 = vrot.slane %v388_v8, 4  ;;  %v375_v37 = vsel %vm188_vm8, 0, %v374_v18 }
 0x261   :  { %v376_v21 = vrot.slane %v373_v12, 4  ;;  %v392_v22 = vperm.slane %v384_v19, %v3111_v14  ;;  %v355_v23 = vpack.i.b16 %v346_v20, %v342_v4  ;;  %v357_v24 = vshrl.u32 %v346_v20, 16 }
 0x262   :  { %v394_v45 = vsel %vm188_vm8, 0, %v393_v26  ;;  %v320_v20 = vperm.slane %v316_v2, %v3103_v1 }
 0x263   :  { %v377_v29 = vsel %vm188_vm8, 0, %v376_v21  ;;  %v395_v30 = vrot.slane %v392_v22, 4  ;;  %v358_v31 = vpack.i.b16 %v357_v24, %v356_v17  ;;  %v401_v32 = vperm.slane %v355_v23, %v3103_v1 }
 0x264   :  { %v440_v34 = vrot.slane %v377_v29, 4  ;;  %v435_v43 = vsel %vm188_vm8, %v376_v21, %v369_v63 }
 0x265   :  { %v396_v38 = vsel %vm188_vm8, 0, %v395_v30  ;;  %v402_v39 = vrot.slane %v401_v32, 4  ;;  %v420_v40 = vperm.slane %v358_v31, %v3103_v1  ;;  %v407_v42 = vperm.slane %v401_v32, %v3111_v14 }
 0x266   :  { %v457_v41 = vrot.slane %v396_v38, 4  ;;  %v441_v44 = vsel %vm188_vm8, %v440_v34, %v375_v37  ;;  %v452_v56 = vsel %vm188_vm8, %v395_v30, %v388_v8  ;;  %v439_v63 = vperm.slane %v435_v43, %v3103_v1 }
 0x267   :  { %v403_v46 = vsel %vm188_vm8, 0, %v402_v39  ;;  %v421_v51 = vrot.slane %v420_v40, 4  ;;  %v426_v52 = vperm.slane %v420_v40, %v3111_v14  ;;  %v445_v54 = vperm.slane %v441_v44, %v3103_v1 }
 0x268   :  { %v411_v53 = vperm.slane %v403_v46, %v3111_v14  ;;  %v458_v57 = vsel %vm188_vm8, %v457_v41, %v394_v45  ;;  %v412_v3 = vrot.slane %v407_v42, 4  ;;  %v456_v9 = vperm.slane %v452_v56, %v3103_v1 }
 0x269   :  { %v422_v62 = vsel %vm188_vm8, 0, %v421_v51  ;;  %v462_v0 = vperm.slane %v458_v57, %v3103_v1  ;;  %v446_v6 = vrot.slane %v445_v54, 4  ;;  %v431_v7 = vrot.slane %v426_v52, 4 }
 0x26a   :  { %v414_v4 = vrot.slane %v411_v53, 4  ;;  %v430_v5 = vperm.slane %v422_v62, %v3111_v14  ;;  %v292_v8 = vperm.slane %v288_v35, %v3111_v14  ;;  %v413_v21 = vsel %vm188_vm8, 0, %v412_v3 }
 0x26b   :  { %v463_v11 = vrot.slane %v462_v0, 4  ;;  %v447_v15 = vsel %vm188_vm8, %v446_v6, %v439_v63  ;;  %v432_v26 = vsel %vm188_vm8, 0, %v431_v7  ;;  %v275_v41 = vperm.slane %v3164_v27, %v3111_v14 }
 0x26c   :  { %v415_v12 = vsel %vm188_vm8, 0, %v414_v4  ;;  %v433_v13 = vrot.slane %v430_v5, 4  ;;  %v451_v18 = vperm.slane %v447_v15, %v3111_v14  ;;  %v469_v24 = vsel %vm188_vm8, %v414_v4, %v407_v42 }
 0x26d   :  { %v474_v17 = vrot.slane %v415_v12, 4  ;;  %v464_v19 = vsel %vm188_vm8, %v463_v11, %v456_v9  ;;  %v473_v33 = vperm.slane %v469_v24, %v3103_v1  ;;  %v310_v42 = vsel %vm188_vm8, %v3145_v61, %v3136_v48 }
 0x26e   :  { %v434_v22 = vsel %vm188_vm8, 0, %v433_v13  ;;  %v468_v23 = vperm.slane %v464_v19, %v3111_v14  ;;  %v506_v30 = vshrl.u32 %v451_v18, 16  ;;  %v486_v34 = vsel %vm188_vm8, %v433_v13, %v426_v52 }
 0x26f   :  { %v491_v28 = vrot.slane %v434_v22, 4  ;;  %v475_v25 = vsel %vm188_vm8, %v474_v17, %v413_v21  ;;  %v321_v43 = vrot.slane %v320_v20, 4  ;;  %v490_v46 = vperm.slane %v486_v34, %v3103_v1 }
 0x270   :  { %v505_v29 = vpack.i.b16 %v468_v23, %v451_v18  ;;  %v507_v31 = vshrl.u32 %v468_v23, 16  ;;  %v479_v32 = vperm.slane %v475_v25, %v3103_v1  ;;  %v293_v53 = vsel %vm188_vm8, %v3141_v55, %v3133_v47 }
 0x271   :  { %v492_v35 = vsel %vm188_vm8, %v491_v28, %v432_v26  ;;  %v331_v54 = vshrl.u32 %v292_v8, 16  ;;  %v304_v56 = vrot.slane %v303_v36, 4  ;;  %v314_v48 = vperm.slane %v310_v42, %v3103_v1 }
 0x272   :  { %v696_v37 = vsel %vm691_vm9, %v505_v29, 0  ;;  %v508_v38 = vpack.i.b16 %v507_v31, %v506_v30  ;;  %v480_v39 = vrot.slane %v479_v32, 4  ;;  %v496_v40 = vperm.slane %v492_v35, %v3103_v1 }
 0x273   :  { %705 = vmatpush.bf16.xpose.msra.mxu1 %v696_v37  ;;  %v329_v57 = vpack.i.b16 %v292_v8, %v275_v41  ;;  %v330_v62 = vshrl.u32 %v275_v41, 16  ;;  %v297_v63 = vperm.slane %v293_v53, %v3103_v1  ;;  %v322_v0 = vsel %vm188_vm8, %v321_v43, %v314_v48 }
 0x274   :  { %v715_v44 = vsel %vm691_vm9, %v508_v38, 0  ;;  %v481_v45 = vsel %vm188_vm8, %v480_v39, %v473_v33  ;;  %v497_v51 = vrot.slane %v496_v40, 4  ;;  %v326_v7 = vperm.slane %v322_v0, %v3111_v14  ;;  %v516_v33 = vpop.permute.xlu0 %515 }
 0x275   :  { %724 = vmatpush.bf16.xpose.msra.mxu2 %v715_v44  ;;  %v485_v52 = vperm.slane %v481_v45, %v3111_v14  ;;  %v332_v47 = vpack.i.b16 %v331_v54, %v330_v62  ;;  %v305_v55 = vsel %vm188_vm8, %v304_v56, %v297_v63 }
 0x276   :  { %v498_v27 = vsel %vm188_vm8, %v497_v51, %v490_v46  ;;  %v309_v11 = vperm.slane %v305_v55, %v3111_v14  ;;  %v337_v8 = vshrl.u32 %v326_v7, 16 }
 0x277   :  { %v502_v61 = vperm.slane %v498_v27, %v3111_v14  ;;  %v512_v3 = vshrl.u32 %v485_v52, 16 }
 0x278   :  { %v335_v12 = vpack.i.b16 %v326_v7, %v309_v11  ;;  %v336_v13 = vshrl.u32 %v309_v11, 16 }
 0x279   :  { %v511_v2 = vpack.i.b16 %v502_v61, %v485_v52  ;;  %v513_v4 = vshrl.u32 %v502_v61, 16  ;;  %v526_v52 = vshrl.u32 %v516_v33, 16 }
 0x27a   :  { %2668 = vmatmul.msk.bf16.vlgmr.msra.gmra.mxu1 %vm691_vm9, %v329_v57  ;;  %v338_v15 = vpack.i.b16 %v337_v8, %v336_v13 }
 0x27b   :  { %v734_v5 = vsel %vm691_vm9, %v511_v2, 0  ;;  %v514_v6 = vpack.i.b16 %v513_v4, %v512_v3 }
 0x27c   :  { %743 = vmatpush.bf16.xpose.msra.mxu3 %v734_v5  ;;  %2669 = vmatmul.msk.bf16.vlgmr.msra.gmra.mxu2 %vm691_vm9, %v332_v47 }
 0x27d   :  { %v753_v9 = vsel %vm691_vm9, %v514_v6, 0 }
 0x27e   :  { %762 = vmatpush.bf16.xpose.msrb.mxu0 %v753_v9 }
 0x283   :  { %2670 = vmatmul.msk.bf16.vlgmr.msra.gmra.mxu3 %vm691_vm9, %v335_v12 }
 0x285   :  { %2671 = vmatmul.msk.bf16.vlgmr.msrb.gmra.mxu0 %vm691_vm9, %v338_v15 }
 0x2f7   :  { %v707_v16 = vpop.f32.mrf.mxu1 }
 0x2f8   :  { %v768_v17 = vmul.f32 0.25, %v707_v16 }
 0x2fa   :  { %v773_v18 = vsel %vm772_vm10, %v768_v17, -inf }
 0x2fb   :  { %774 = vmax.xlane.f32.xlu1 %v773_v18 }
 0x2ff   :  { %v709_v19 = vpop.f32.mrf.mxu1  ;;  %v726_v20 = vpop.f32.mrf.mxu2 }
 0x300   :  { %v769_v21 = vmul.f32 0.25, %v726_v20 }
 0x302   :  { %v764_v22 = vpop.f32.mrf.mxu0  ;;  %v776_v23 = vsel %vm772_vm10, %v769_v21, -inf }
 0x303   :  { %v771_v24 = vmul.f32 0.25, %v764_v22  ;;  %777 = vmax.xlane.f32.xlu0 %v776_v23 }
 0x305   :  { %v782_v26 = vsel %vm772_vm10, %v771_v24, -inf }
 0x306   :  { %783 = vmax.xlane.f32.xlu2 %v782_v26  ;;  %v745_v28 = vpop.f32.mrf.mxu3 }
 0x307   :  { %v728_v25 = vpop.f32.mrf.mxu2  ;;  %v770_v29 = vmul.f32 0.25, %v745_v28 }
 0x309   :  { %v779_v31 = vsel %vm772_vm10, %v770_v29, -inf }
 0x30a   :  { %v766_v30 = vpop.f32.mrf.mxu0 }
 0x30e   :  { %780 = vmax.xlane.f32.xlu2 %v779_v31  ;;  %v747_v32 = vpop.f32.mrf.mxu3 }
 0x314   :  { %519 = vrot.lane.b32.xlu1 %v3094_v59, %s2951_s26 }
 0x317   :  { %521 = vrot.lane.b32.xlu0 %v3098_v60, %s2951_s26 }
 0x326   :  { %517 = vrot.lane.b32.xlu2 %v3087_v58, %s2951_s26 }
 0x36e   :  { %v775_v34 = vpop.xlane.xlu1 %774 }
 0x36f   :  { %v785_v35 = vsub.f32 %v768_v17, %v775_v34 }
 0x371   :  { %v789_v36 = vmul.f32 1.442695, %v785_v35 }
 0x373   :  { %2866 = vpow2.f32 %v789_v36 }
 0x376   :  { %v778_v37 = vpop.xlane.xlu0 %777 }
 0x377   :  { %v786_v38 = vsub.f32 %v769_v21, %v778_v37 }
 0x379   :  { %v3245_v39 = vpop.eup %2866  ;;  %v791_v40 = vmul.f32 1.442695, %v786_v38  ;;  %v784_v41 = vpop.xlane.xlu2 %783 }
 0x37a   :  { %v797_v59 = vsel %vm772_vm10, %v3245_v39, 0.0  ;;  %v788_v58 = vsub.f32 %v771_v24, %v784_v41 }
 0x37b   :  { %2868 = vpow2.f32 %v791_v40  ;;  %798 = vadd.xlane.f32.xlu1 %v797_v59 }
 0x37c   :  { %v795_v46 = vmul.f32 1.442695, %v788_v58 }
 0x381   :  { %v3249_v60 = vpop.eup %2868  ;;  %v781_v42 = vpop.xlane.xlu2 %780 }
 0x382   :  { %v787_v43 = vsub.f32 %v770_v29, %v781_v42  ;;  %v800_v44 = vsel %vm772_vm10, %v3249_v60, 0.0 }
 0x383   :  { %801 = vadd.xlane.f32.xlu0 %v800_v44 }
 0x384   :  { %v793_v45 = vmul.f32 1.442695, %v787_v43 }
 0x386   :  { %2870 = vpow2.f32 %v793_v45  ;;  %v520_v51 = vpop.permute.xlu1 %519 }
 0x387   :  { %v525_v53 = vpack.i.b16 %v520_v51, %v516_v33  ;;  %v527_v27 = vshrl.u32 %v520_v51, 16  ;;  %2872 = vpow2.f32 %v795_v46 }
 0x389   :  { %v528_v54 = vpack.i.b16 %v527_v27, %v526_v52  ;;  %v539_v56 = vperm.slane %v525_v53, %v3103_v1  ;;  %v518_v48 = vpop.permute.xlu2 %517  ;;  %v522_v61 = vpop.permute.xlu0 %521 }
 0x38a   :  { %v532_v57 = vshrl.u32 %v518_v48, 16  ;;  %v531_v62 = vpack.i.b16 %v522_v61, %v518_v48  ;;  %v533_v63 = vshrl.u32 %v522_v61, 16 }
 0x38b   :  { %v540_v0 = vrot.slane %v539_v56, 4  ;;  %v545_v2 = vperm.slane %v539_v56, %v3111_v14  ;;  %v558_v3 = vperm.slane %v528_v54, %v3103_v1 }
 0x38c   :  { %v3256_v4 = vpop.eup %2870  ;;  %v534_v47 = vpack.i.b16 %v533_v63, %v532_v57  ;;  %v577_v55 = vperm.slane %v531_v62, %v3103_v1 }
 0x38d   :  { %v541_v5 = vsel %vm188_vm8, 0, %v540_v0  ;;  %v559_v6 = vrot.slane %v558_v3, 4  ;;  %v564_v7 = vperm.slane %v558_v3, %v3111_v14  ;;  %v550_v13 = vrot.slane %v545_v2, 4  ;;  %v3267_v17 = vpop.eup %2872 }
 0x38e   :  { %v549_v9 = vperm.slane %v541_v5, %v3111_v14  ;;  %v578_v11 = vrot.slane %v577_v55, 4  ;;  %v583_v8 = vperm.slane %v577_v55, %v3111_v14  ;;  %v596_v12 = vperm.slane %v534_v47, %v3103_v1 }
 0x38f   :  { %v560_v15 = vsel %vm188_vm8, 0, %v559_v6  ;;  %v803_v16 = vsel %vm772_vm10, %v3256_v4, 0.0  ;;  %v569_v20 = vrot.slane %v564_v7, 4  ;;  %v806_v32 = vsel %vm772_vm10, %v3267_v17, 0.0 }
 0x390   :  { %v552_v18 = vrot.slane %v549_v9, 4  ;;  %v568_v19 = vperm.slane %v560_v15, %v3111_v14  ;;  %v579_v21 = vsel %vm188_vm8, 0, %v578_v11  ;;  %804 = vadd.xlane.f32.xlu2 %v803_v16  ;;  %v588_v23 = vrot.slane %v583_v8, 4 }
 0x391   :  { %v587_v22 = vperm.slane %v579_v21, %v3111_v14  ;;  %v597_v24 = vrot.slane %v596_v12, 4  ;;  %v602_v25 = vperm.slane %v596_v12, %v3111_v14  ;;  %v551_v33 = vsel %vm188_vm8, 0, %v550_v13 }
 0x392   :  { %v553_v26 = vsel %vm188_vm8, 0, %v552_v18  ;;  %v571_v28 = vrot.slane %v568_v19, 4  ;;  %v570_v34 = vsel %vm188_vm8, 0, %v569_v20  ;;  %v611_v37 = vsel %vm188_vm8, %v552_v18, %v545_v2 }
 0x393   :  { %v616_v29 = vrot.slane %v553_v26, 4  ;;  %v590_v30 = vrot.slane %v587_v22, 4  ;;  %v598_v31 = vsel %vm188_vm8, 0, %v597_v24  ;;  %v589_v40 = vsel %vm188_vm8, 0, %v588_v23 }
 0x394   :  { %v572_v35 = vsel %vm188_vm8, 0, %v571_v28  ;;  %v606_v36 = vperm.slane %v598_v31, %v3111_v14  ;;  %v607_v59 = vrot.slane %v602_v25, 4  ;;  %v628_v46 = vsel %vm188_vm8, %v571_v28, %v564_v7 }
 0x395   :  { %v633_v38 = vrot.slane %v572_v35, 4  ;;  %v591_v41 = vsel %vm188_vm8, 0, %v590_v30  ;;  %v617_v43 = vsel %vm188_vm8, %v616_v29, %v551_v33  ;;  %v645_v44 = vsel %vm188_vm8, %v590_v30, %v583_v8 }
 0x396   :  { %v609_v42 = vrot.slane %v606_v36, 4  ;;  %v650_v58 = vrot.slane %v591_v41, 4  ;;  %v621_v45 = vperm.slane %v617_v43, %v3103_v1  ;;  %v615_v56 = vperm.slane %v611_v37, %v3103_v1 }
 0x397   :  { %v634_v51 = vsel %vm188_vm8, %v633_v38, %v570_v34  ;;  %v608_v57 = vsel %vm188_vm8, 0, %v607_v59  ;;  %v632_v62 = vperm.slane %v628_v46, %v3103_v1  ;;  %v649_v0 = vperm.slane %v645_v44, %v3103_v1 }
 0x398   :  { %v610_v52 = vsel %vm188_vm8, 0, %v609_v42  ;;  %807 = vadd.xlane.f32.xlu2 %v806_v32  ;;  %v638_v53 = vperm.slane %v634_v51, %v3103_v1  ;;  %v651_v27 = vsel %vm188_vm8, %v650_v58, %v589_v40  ;;  %v622_v48 = vrot.slane %v621_v45, 4 }
 0x399   :  { %v667_v54 = vrot.slane %v610_v52, 4  ;;  %v655_v61 = vperm.slane %v651_v27, %v3103_v1  ;;  %v662_v47 = vsel %vm188_vm8, %v609_v42, %v602_v25 }
 0x39a   :  { %v639_v63 = vrot.slane %v638_v53, 4  ;;  %v623_v2 = vsel %vm188_vm8, %v622_v48, %v615_v56  ;;  %v666_v8 = vperm.slane %v662_v47, %v3103_v1 }
 0x39b   :  { %v656_v3 = vrot.slane %v655_v61, 4  ;;  %v668_v55 = vsel %vm188_vm8, %v667_v54, %v608_v57  ;;  %v627_v5 = vperm.slane %v623_v2, %v3111_v14 }
 0x39c   :  { %v640_v6 = vsel %vm188_vm8, %v639_v63, %v632_v62  ;;  %v672_v7 = vperm.slane %v668_v55, %v3103_v1 }
 0x39d   :  { %v644_v9 = vperm.slane %v640_v6, %v3111_v14  ;;  %v657_v11 = vsel %vm188_vm8, %v656_v3, %v649_v0  ;;  %v682_v15 = vshrl.u32 %v627_v5, 16 }
 0x39e   :  { %v673_v12 = vrot.slane %v672_v7, 4  ;;  %v661_v18 = vperm.slane %v657_v11, %v3111_v14 }
 0x39f   :  { %v681_v13 = vpack.i.b16 %v644_v9, %v627_v5  ;;  %v683_v16 = vshrl.u32 %v644_v9, 16 }
 0x3a0   :  { %v674_v19 = vsel %vm188_vm8, %v673_v12, %v666_v8  ;;  %v688_v26 = vshrl.u32 %v661_v18, 16  ;;  %v2803_v8 = vld [vmem:[%s3861_s5 + $0x8] sm:$0xff] }
 0x3a1   :  { %v826_v20 = vsel %vm824_vm11, %v681_v13, 0  ;;  %v684_v21 = vpack.i.b16 %v683_v16, %v682_v15  ;;  %v678_v22 = vperm.slane %v674_v19, %v3111_v14 }
 0x3a2   :  { %835 = vmatpush.bf16.msrb.mxu1 %v826_v20 }
 0x3a3   :  { %v845_v23 = vsel %vm824_vm11, %v684_v21, 0  ;;  %v687_v24 = vpack.i.b16 %v678_v22, %v661_v18  ;;  %v689_v28 = vshrl.u32 %v678_v22, 16 }
 0x3a4   :  { %854 = vmatpush.bf16.msrb.mxu2 %v845_v23 }
 0x3a5   :  { %v864_v25 = vsel %vm824_vm11, %v687_v24, 0  ;;  %v690_v29 = vpack.i.b16 %v689_v28, %v688_v26 }
 0x3a6   :  { %873 = vmatpush.bf16.msrb.mxu3 %v864_v25  ;;  %1119 = vmatpush.bf16.msra.mxu1 %v2803_v8 }
 0x3a7   :  { %v883_v30 = vsel %vm824_vm11, %v690_v29, 0 }
 0x3a8   :  { %892 = vmatpush.bf16.msra.mxu0 %v883_v30 }
 0x3ee   :  { %v799_v31 = vpop.xlane.xlu1 %798 }
 0x3ef   :  { %2874 = vrcp.f32 %v799_v31 }
 0x3f5   :  { %v2875_v32 = vpop.eup %2874 }
 0x3f6   :  { %v813_v33 = vmul.f32 %v2875_v32, %v3245_v39  ;;  %v802_v34 = vpop.xlane.xlu0 %801 }
 0x3f7   :  { %2876 = vrcp.f32 %v802_v34 }
 0x3f8   :  { %v817_v35 = vpack.c.bf16 %v813_v33, %v813_v33 }
 0x3fa   :  { %2672 = vmatmul.msk.bf16.vlgmr.msrb.gmra.mxu1 %vm772_vm10, %v817_v35 }
 0x3fd   :  { %v2877_v36 = vpop.eup %2876 }
 0x3fe   :  { %v814_v37 = vmul.f32 %v2877_v36, %v3249_v60 }
 0x400   :  { %v818_v38 = vpack.c.bf16 %v814_v37, %v814_v37 }
 0x402   :  { %2673 = vmatmul.msk.bf16.vlgmr.msrb.gmra.mxu2 %vm772_vm10, %v818_v38 }
 0x403   :  { %v805_v40 = vpop.xlane.xlu2 %804 }
 0x404   :  { %2878 = vrcp.f32 %v805_v40 }
 0x40a   :  { %v2879_v41 = vpop.eup %2878 }
 0x40b   :  { %v815_v59 = vmul.f32 %v2879_v41, %v3256_v4  ;;  %v808_v42 = vpop.xlane.xlu2 %807 }
 0x40c   :  { %2880 = vrcp.f32 %v808_v42 }
 0x40d   :  { %v819_v58 = vpack.c.bf16 %v815_v59, %v815_v59 }
 0x40f   :  { %2674 = vmatmul.msk.bf16.vlgmr.msrb.gmra.mxu3 %vm772_vm10, %v819_v58 }
 0x412   :  { %v2881_v39 = vpop.eup %2880 }
 0x413   :  { %v816_v43 = vmul.f32 %v2881_v39, %v3267_v17 }
 0x415   :  { %v820_v44 = vpack.c.bf16 %v816_v43, %v816_v43 }
 0x417   :  { %2675 = vmatmul.msk.bf16.vlgmr.msra.gmra.mxu0 %vm772_vm10, %v820_v44 }
 0x477   :  { %v837_v60 = vpop.f32.mrf.mxu1 }
 0x478   :  { %v898_v45 = vrot.slane %v837_v60, 4  ;;  %v904_v52 = vperm.slane %v837_v60, %v3103_v1 }
 0x47a   :  { %v900_v51 = vsel %vm188_vm8, 0.0, %v898_v45  ;;  %v921_v27 = vrot.slane %v904_v52, 4 }
 0x47b   :  { %v908_v4 = vperm.slane %v900_v51, %v3103_v1 }
 0x47d   :  { %v933_v57 = vrot.slane %v908_v4, 4 }
 0x47f   :  { %v839_v46 = vpop.f32.mrf.mxu1 }
 0x485   :  { %v856_v53 = vpop.f32.mrf.mxu2 }
 0x486   :  { %v909_v54 = vrot.slane %v856_v53, 4  ;;  %v914_v56 = vperm.slane %v856_v53, %v3103_v1 }
 0x488   :  { %v910_v48 = vsel %vm188_vm8, 0.0, %v909_v54  ;;  %v919_v17 = vrot.slane %v914_v56, 4  ;;  %v922_v61 = vsel %vm188_vm8, %v914_v56, %v921_v27 }
 0x489   :  { %v918_v62 = vperm.slane %v910_v48, %v3103_v1  ;;  %v930_v63 = vperm.slane %v922_v61, %v3111_v14 }
 0x48a   :  { %v920_v0 = vsel %vm188_vm8, %v919_v17, %v904_v52 }
 0x48b   :  { %v926_v2 = vperm.slane %v920_v0, %v3111_v14  ;;  %v931_v3 = vrot.slane %v918_v62, 4  ;;  %v934_v47 = vsel %vm188_vm8, %v918_v62, %v933_v57  ;;  %v945_v55 = vrot.slane %v930_v63, 4 }
 0x48c   :  { %v942_v5 = vperm.slane %v934_v47, %v3111_v14 }
 0x48d   :  { %v932_v6 = vsel %vm188_vm8, %v931_v3, %v908_v4  ;;  %v943_v7 = vrot.slane %v926_v2, 4  ;;  %v946_v9 = vsel %vm188_vm8, 0.0, %v945_v55  ;;  %v858_v11 = vpop.f32.mrf.mxu2  ;;  %v1003_v30 = vsel %vm188_vm8, %v945_v55, %v926_v2 }
 0x48e   :  { %v938_v12 = vperm.slane %v932_v6, %v3111_v14  ;;  %v949_v13 = vrot.slane %v942_v5, 4  ;;  %v1008_v15 = vrot.slane %v946_v9, 4  ;;  %v1007_v59 = vperm.slane %v1003_v30, %v3103_v1 }
 0x48f   :  { %v944_v16 = vsel %vm188_vm8, 0.0, %v943_v7 }
 0x490   :  { %v947_v18 = vrot.slane %v938_v12, 4  ;;  %v950_v19 = vsel %vm188_vm8, 0.0, %v949_v13  ;;  %v1009_v20 = vsel %vm188_vm8, %v1008_v15, %v944_v16  ;;  %v1014_v26 = vsel %vm188_vm8, %v949_v13, %v938_v12 }
 0x491   :  { %v1013_v21 = vperm.slane %v1009_v20, %v3103_v1  ;;  %v1019_v22 = vrot.slane %v950_v19, 4  ;;  %v1018_v40 = vperm.slane %v1014_v26, %v3103_v1 }
 0x492   :  { %v948_v23 = vsel %vm188_vm8, 0.0, %v947_v18  ;;  %v875_v24 = vpop.f32.mrf.mxu3 }
 0x493   :  { %v951_v28 = vrot.slane %v875_v24, 4  ;;  %v956_v25 = vperm.slane %v875_v24, %v3103_v1  ;;  %v1020_v29 = vsel %vm188_vm8, %v1019_v22, %v948_v23  ;;  %v1025_v31 = vrot.slane %v1013_v21, 4 }
 0x494   :  { %v894_v32 = vpop.f32.mrf.mxu0  ;;  %v1024_v33 = vperm.slane %v1020_v29, %v3103_v1 }
 0x495   :  { %v952_v34 = vsel %vm188_vm8, 0.0, %v951_v28  ;;  %v973_v35 = vrot.slane %v956_v25, 4  ;;  %v961_v36 = vrot.slane %v894_v32, 4  ;;  %v966_v37 = vperm.slane %v894_v32, %v3103_v1 }
 0x496   :  { %v960_v38 = vperm.slane %v952_v34, %v3103_v1  ;;  %v1031_v41 = vrot.slane %v1024_v33, 4  ;;  %v1026_v51 = vsel %vm188_vm8, %v1025_v31, %v1007_v59 }
 0x497   :  { %v962_v42 = vsel %vm188_vm8, 0.0, %v961_v36  ;;  %v971_v58 = vrot.slane %v966_v37, 4  ;;  %v974_v39 = vsel %vm188_vm8, %v966_v37, %v973_v35  ;;  %v1030_v0 = vperm.slane %v1026_v51, %v3111_v14  ;;  %v2802_v35 = vld [vmem:[%s3861_s5] sm:$0xff] }
 0x498   :  { %v985_v43 = vrot.slane %v960_v38, 4  ;;  %v970_v44 = vperm.slane %v962_v42, %v3103_v1  ;;  %v982_v60 = vperm.slane %v974_v39, %v3111_v14  ;;  %v1032_v45 = vsel %vm188_vm8, %v1031_v41, %v1018_v40  ;;  %1120 = vmatpush.bf16.msra.mxu1 %v2802_v35  ;;  %v2844_v42 = vld [vmem:[%s3862_s6] ss:$0 sm:$0xff] }
 0x499   :  { %v972_v46 = vsel %vm188_vm8, %v971_v58, %v956_v25  ;;  %v1036_v52 = vperm.slane %v1032_v45, %v3111_v14  ;;  %v1039_v26 = vrot.slane %v1030_v0, 4  ;;  %v2806_v35 = vld [vmem:[%s3867_s11] sm:$0xff] }
 0x49a   :  { %v978_v4 = vperm.slane %v972_v46, %v3111_v14  ;;  %v983_v53 = vrot.slane %v970_v44, 4  ;;  %v986_v27 = vsel %vm188_vm8, %v970_v44, %v985_v43  ;;  %v997_v54 = vrot.slane %v982_v60, 4  ;;  %v877_v56 = vpop.f32.mrf.mxu3 }
 0x49b   :  { %v994_v48 = vperm.slane %v986_v27, %v3111_v14  ;;  %v1037_v17 = vrot.slane %v1036_v52, 4  ;;  %v1040_v30 = vsel %vm188_vm8, %v1036_v52, %v1039_v26 }
 0x49c   :  { %v984_v61 = vsel %vm188_vm8, %v983_v53, %v960_v38  ;;  %v995_v57 = vrot.slane %v978_v4, 4  ;;  %v998_v62 = vsel %vm188_vm8, 0.0, %v997_v54  ;;  %v896_v63 = vpop.f32.mrf.mxu0  ;;  %v1041_v9 = vsel %vm188_vm8, %v997_v54, %v978_v4 }
 0x49d   :  { %v990_v2 = vperm.slane %v984_v61, %v3111_v14  ;;  %v1001_v3 = vrot.slane %v994_v48, 4  ;;  %v1046_v47 = vrot.slane %v998_v62, 4  ;;  %v1038_v5 = vsel %vm188_vm8, %v1037_v17, %v1030_v0  ;;  %v2804_v63 = vld [vmem:[%s3865_s9] sm:$0xff] }
 0x49e   :  { %v996_v55 = vsel %vm188_vm8, 0.0, %v995_v57  ;;  %v1045_v15 = vperm.slane %v1041_v9, %v3103_v1 }
 0x49f   :  { %v999_v6 = vrot.slane %v990_v2, 4  ;;  %v1002_v7 = vsel %vm188_vm8, 0.0, %v1001_v3  ;;  %v1047_v11 = vsel %vm188_vm8, %v1046_v47, %v996_v55  ;;  %v1052_v16 = vsel %vm188_vm8, %v1001_v3, %v990_v2 }
 0x4a0   :  { %v1051_v8 = vperm.slane %v1047_v11, %v3103_v1  ;;  %v1057_v12 = vrot.slane %v1002_v7, 4  ;;  %v1056_v22 = vperm.slane %v1052_v16, %v3103_v1 }
 0x4a1   :  { %v1000_v13 = vsel %vm188_vm8, 0.0, %v999_v6 }
 0x4a2   :  { %v1063_v18 = vrot.slane %v1051_v8, 4  ;;  %v1058_v19 = vsel %vm188_vm8, %v1057_v12, %v1000_v13 }
 0x4a3   :  { %v1062_v20 = vperm.slane %v1058_v19, %v3103_v1  ;;  %v2845_v19 = vld [vmem:[%s3863_s7] ss:$0 sm:$0xff] }
 0x4a4   :  { %v1064_v21 = vsel %vm188_vm8, %v1063_v18, %v1045_v15 }
 0x4a5   :  { %v1068_v23 = vperm.slane %v1064_v21, %v3111_v14  ;;  %v1069_v24 = vrot.slane %v1062_v20, 4 }
 0x4a7   :  { %v1070_v28 = vsel %vm188_vm8, %v1069_v24, %v1056_v22  ;;  %v1077_v25 = vrot.slane %v1068_v23, 4 }
 0x4a8   :  { %v1074_v29 = vperm.slane %v1070_v28, %v3111_v14 }
 0x4aa   :  { %v1075_v31 = vrot.slane %v1074_v29, 4  ;;  %v1078_v32 = vsel %vm188_vm8, %v1074_v29, %v1077_v25 }
 0x4ab   :  { %v2831_v33 = vpack.i.bf16 %v1078_v32, %v1040_v30  ;;  %v2808_v32 = vld [vmem:[%s3867_s11 + $0x10] sm:$0xff] }
 0x4ac   :  { %v1076_v34 = vsel %vm188_vm8, %v1075_v31, %v1068_v23  ;;  %v2846_v23 = vld [vmem:[%s3864_s8] ss:$0 sm:$0xff]  ;;  %v2809_v31 = vld [vmem:[%s3867_s11 + $0x18] sm:$0xff] }
 0x4ad   :  { %2832 = vrot.lane.b32.xlu0 %v2831_v33, %s2954_s29  ;;  %1286 = vmatpush.bf16.msra.mxu3 %v2809_v31  ;;  %v2807_v33 = vld [vmem:[%s3867_s11 + $0x8] sm:$0xff] }
 0x4b1   :  { %1287 = vmatpush.bf16.msra.mxu3 %v2808_v32 }
 0x4b5   :  { %1288 = vmatpush.bf16.msra.mxu3 %v2807_v33 }
 0x4b9   :  { %1289 = vmatpush.bf16.msra.mxu3 %v2806_v35 }
 0x51f   :  { %v2833_v36 = vpop.permute.xlu0 %2832 }
 0x520   :  { %v2835_v37 = vunpack.i.h.bf16 %v2833_v36  ;;  %v2834_v38 = vunpack.i.l.bf16 %v2833_v36 }
 0x522   :  { %v1088_v40 = vsel %vm691_vm9, %v1076_v34, %v2835_v37  ;;  %v1087_v41 = vsel %vm691_vm9, %v1038_v5, %v2834_v38  ;;  %v2847_v34 = vld [vmem:[%s3866_s10] ss:$0 sm:$0xff] }
 0x523   :  { %v1089_v59 = vpack.c.bf16 %v1088_v40, %v1087_v41 }
 0x525   :  { %2684 = vmatmul.msk.bf16.vlgmr.msra.gmra.mxu1 %vm62_vm0, %v1089_v59 }
 0x5a2   :  { %v1122_v58 = vpop.f32.mrf.mxu1 }
 0x5a3   :  { %v1123_v39 = vadd.f32 %v2844_v42, %v1122_v58 }
 0x5a5   :  { %v1127_v43 = vadd.f32 %v1123_v39, %v3075_v49 }
 0x5a7   :  { %v1131_v44 = vsel %vm62_vm0, %v1127_v43, 0.0 }
 0x5a8   :  { %1132 = vadd.xlane.f32.xlu1 %v1131_v44 }
 0x5aa   :  { %v1124_v60 = vpop.f32.mrf.mxu1 }
 0x5ab   :  { %v1125_v45 = vadd.f32 %v2844_v42, %v1124_v60 }
 0x5ad   :  { %v1128_v46 = vadd.f32 %v1125_v45, %v3077_v50  ;;  %v2805_v50 = vld [vmem:[%s3865_s9 + $0x8] sm:$0xff] }
 0x5ae   :  { %1215 = vmatpush.bf16.msra.mxu2 %v2805_v50 }
 0x5af   :  { %v1134_v51 = vsel %vm62_vm0, %v1128_v46, 0.0 }
 0x5b0   :  { %1135 = vadd.xlane.f32.xlu2 %v1134_v51 }
 0x5b2   :  { %1216 = vmatpush.bf16.msra.mxu2 %v2804_v63 }
 0x61b   :  { %v1133_v52 = vpop.xlane.xlu1 %1132 }
 0x61c   :  { %v1137_v4 = vmul.f32 %v1133_v52, %v3055_v10 }
 0x61e   :  { %v1139_v53 = vsub.f32 %v1127_v43, %v1137_v4 }
 0x620   :  { %v1141_v27 = vmul.f32 %v1139_v53, %v1139_v53 }
 0x622   :  { %v1143_v54 = vsel %vm62_vm0, %v1141_v27, 0.0 }
 0x623   :  { %v1136_v56 = vpop.xlane.xlu2 %1135  ;;  %1144 = vadd.xlane.f32.xlu1 %v1143_v54 }
 0x624   :  { %v1138_v49 = vmul.f32 %v1136_v56, %v3055_v10 }
 0x626   :  { %v1140_v48 = vsub.f32 %v1128_v46, %v1138_v49 }
 0x628   :  { %v1142_v17 = vmul.f32 %v1140_v48, %v1140_v48 }
 0x62a   :  { %v1146_v61 = vsel %vm62_vm0, %v1142_v17, 0.0  ;;  %v2848_v17 = vld [vmem:[%s3868_s12] ss:$0 sm:$0xff] }
 0x62b   :  { %1147 = vadd.xlane.f32.xlu2 %v1146_v61 }
 0x696   :  { %v1145_v57 = vpop.xlane.xlu1 %1144 }
 0x697   :  { %v1149_v62 = vmul.f32 %v1145_v57, %v3055_v10 }
 0x699   :  { %v1151_v0 = vadd.f32 1e-12, %v1149_v62 }
 0x69b   :  { %2882 = vrsqrt.f32 %v1151_v0  ;;  %vm1159_vm13 = vweird.f32 %v1151_v0 }
 0x69e   :  { %v1148_v2 = vpop.xlane.xlu2 %1147 }
 0x69f   :  { %v1150_v3 = vmul.f32 %v1148_v2, %v3055_v10 }
 0x6a1   :  { %v2883_v47 = vpop.eup %2882  ;;  %v1152_v55 = vadd.f32 1e-12, %v1150_v3 }
 0x6a2   :  { %v1154_v5 = vmul.f32 %v2883_v47, %v1151_v0  ;;  %vm1160_vm12 = vweird.f32 %v2883_v47 }
 0x6a3   :  { %2884 = vrsqrt.f32 %v1152_v55  ;;  %vm1161_vm14 = vmor %vm1159_vm13, %vm1160_vm12  ;;  %vm1169_vm1 = vweird.f32 %v1152_v55 }
 0x6a4   :  { %v1155_v6 = vmul.f32 %v2883_v47, %v1154_v5 }
 0x6a6   :  { %v1156_v7 = vmul.f32 0.5, %v1155_v6 }
 0x6a8   :  { %v1157_v9 = vsub.f32 1.5, %v1156_v7 }
 0x6a9   :  { %v2885_v11 = vpop.eup %2884 }
 0x6aa   :  { %v1158_v8 = vmul.f32 %v2883_v47, %v1157_v9  ;;  %v1164_v12 = vmul.f32 %v2885_v11, %v1152_v55  ;;  %vm1170_vm15 = vweird.f32 %v2885_v11 }
 0x6ab   :  { %vm1171_vm2 = vmor %vm1169_vm1, %vm1170_vm15 }
 0x6ac   :  { %v1165_v13 = vmul.f32 %v2885_v11, %v1164_v12  ;;  %v1162_v15 = vsel %vm1161_vm14, %v2883_v47, %v1158_v8 }
 0x6ad   :  { %v1173_v20 = vmul.f32 %v1162_v15, %v1139_v53  ;;  %v2811_v15 = vld [vmem:[%s3859_s3 + $0x18] sm:$0xff] }
 0x6ae   :  { %v1166_v16 = vmul.f32 0.5, %v1165_v13  ;;  %1386 = vmatpush.bf16.msrb.mxu0 %v2811_v15 }
 0x6af   :  { %v1178_v24 = vmul.f32 %v2845_v19, %v1173_v20 }
 0x6b0   :  { %v1167_v18 = vsub.f32 1.5, %v1166_v16 }
 0x6b1   :  { %v1183_v25 = vadd.f32 %v2846_v23, %v1178_v24 }
 0x6b2   :  { %v1168_v21 = vmul.f32 %v2885_v11, %v1167_v18 }
 0x6b4   :  { %v1172_v22 = vsel %vm1171_vm2, %v2885_v11, %v1168_v21 }
 0x6b5   :  { %v1174_v26 = vmul.f32 %v1172_v22, %v1140_v48 }
 0x6b7   :  { %v1179_v28 = vmul.f32 %v2845_v19, %v1174_v26  ;;  %v2810_v19 = vld [vmem:[%s3859_s3 + $0x10] sm:$0xff] }
 0x6b8   :  { %1387 = vmatpush.bf16.msrb.mxu0 %v2810_v19 }
 0x6b9   :  { %v1184_v29 = vadd.f32 %v2846_v23, %v1179_v28 }
 0x6bb   :  { %v1185_v30 = vpack.c.bf16 %v1184_v29, %v1183_v25 }
 0x6bd   :  { %2693 = vmatmul.msk.bf16.vlgmr.msra.gmra.mxu2 %vm62_vm0, %v1185_v30 }
 0x740   :  { %v1218_v36 = vpop.f32.mrf.mxu2 }
 0x741   :  { %v1219_v37 = vadd.f32 %v2847_v34, %v1218_v36 }
 0x743   :  { %v1223_v38 = vmul.f32 %v1219_v37, %v1219_v37 }
 0x745   :  { %v1225_v40 = vmul.f32 %v1223_v38, %v1219_v37 }
 0x747   :  { %v1227_v41 = vmul.f32 0.044715, %v1225_v40 }
 0x748   :  { %v1220_v59 = vpop.f32.mrf.mxu2 }
 0x749   :  { %v1229_v42 = vadd.f32 %v1227_v41, %v1219_v37  ;;  %v1221_v58 = vadd.f32 %v2847_v34, %v1220_v59  ;;  %v2850_v59 = vld [vmem:[%s3870_s14] ss:$0 sm:$0xff] }
 0x74b   :  { %v1231_v39 = vmul.f32 0.7978846, %v1229_v42  ;;  %v1224_v43 = vmul.f32 %v1221_v58, %v1221_v58 }
 0x74d   :  { %v1226_v44 = vmul.f32 %v1224_v43, %v1221_v58  ;;  %2886 = vtanh.f32 %v1231_v39 }
 0x74f   :  { %v1228_v60 = vmul.f32 0.044715, %v1226_v44 }
 0x751   :  { %v1230_v45 = vadd.f32 %v1228_v60, %v1221_v58 }
 0x753   :  { %v1232_v46 = vmul.f32 0.7978846, %v1230_v45  ;;  %v2887_v51 = vpop.eup %2886  ;;  %v2851_v45 = vld [vmem:[%s3860_s4 + $0x1] ss:$0 sm:$0xff] }
 0x754   :  { %v1235_v52 = vadd.f32 1.0, %v2887_v51 }
 0x755   :  { %2888 = vtanh.f32 %v1232_v46 }
 0x756   :  { %v1237_v53 = vmul.f32 0.5, %v1235_v52 }
 0x758   :  { %v1239_v56 = vmul.f32 %v1237_v53, %v1219_v37  ;;  %v2849_v37 = vld [vmem:[%s3869_s13] ss:$0 sm:$0xff] }
 0x75b   :  { %v2889_v4 = vpop.eup %2888 }
 0x75c   :  { %v1236_v27 = vadd.f32 1.0, %v2889_v4 }
 0x75e   :  { %v1238_v54 = vmul.f32 0.5, %v1236_v27 }
 0x760   :  { %v1240_v49 = vmul.f32 %v1238_v54, %v1221_v58 }
 0x762   :  { %v1241_v48 = vpack.c.bf16 %v1240_v49, %v1239_v56 }
 0x764   :  { %2710 = vmatmul.msk.bf16.vlgmr.msra.gmra.mxu3 %vm1278_vm3, %v1241_v48 }
 0x7e7   :  { %v1291_v61 = vpop.f32.mrf.mxu3 }
 0x7e8   :  { %v1292_v50 = vadd.f32 %v2848_v17, %v1291_v61 }
 0x7ea   :  { %v1296_v57 = vadd.f32 %v1292_v50, %v1183_v25 }
 0x7ec   :  { %v1300_v62 = vsel %vm62_vm0, %v1296_v57, 0.0 }
 0x7ed   :  { %1301 = vadd.xlane.f32.xlu1 %v1300_v62 }
 0x7ef   :  { %v1293_v63 = vpop.f32.mrf.mxu3 }
 0x7f0   :  { %v1294_v0 = vadd.f32 %v2848_v17, %v1293_v63 }
 0x7f2   :  { %v1297_v2 = vadd.f32 %v1294_v0, %v1184_v29 }
 0x7f4   :  { %v1303_v3 = vsel %vm62_vm0, %v1297_v2, 0.0 }
 0x7f5   :  { %1304 = vadd.xlane.f32.xlu0 %v1303_v3 }
 0x860   :  { %v1302_v47 = vpop.xlane.xlu1 %1301 }
 0x861   :  { %v1306_v55 = vmul.f32 %v1302_v47, %v3055_v10 }
 0x863   :  { %v1308_v5 = vsub.f32 %v1296_v57, %v1306_v55 }
 0x865   :  { %v1310_v6 = vmul.f32 %v1308_v5, %v1308_v5 }
 0x867   :  { %v1312_v7 = vsel %vm62_vm0, %v1310_v6, 0.0 }
 0x868   :  { %v1305_v9 = vpop.xlane.xlu0 %1304  ;;  %1313 = vadd.xlane.f32.xlu2 %v1312_v7 }
 0x869   :  { %v1307_v11 = vmul.f32 %v1305_v9, %v3055_v10 }
 0x86b   :  { %v1309_v8 = vsub.f32 %v1297_v2, %v1307_v11 }
 0x86d   :  { %v1311_v12 = vmul.f32 %v1309_v8, %v1309_v8 }
 0x86f   :  { %v1315_v13 = vsel %vm62_vm0, %v1311_v12, 0.0 }
 0x870   :  { %1316 = vadd.xlane.f32.xlu1 %v1315_v13 }
 0x8db   :  { %v1314_v16 = vpop.xlane.xlu2 %1313 }
 0x8dc   :  { %v1318_v18 = vmul.f32 %v1314_v16, %v3055_v10 }
 0x8de   :  { %v1320_v20 = vadd.f32 1e-12, %v1318_v18 }
 0x8e0   :  { %2890 = vrsqrt.f32 %v1320_v20  ;;  %vm1328_vm5 = vweird.f32 %v1320_v20 }
 0x8e3   :  { %v1317_v21 = vpop.xlane.xlu1 %1316 }
 0x8e4   :  { %v1319_v22 = vmul.f32 %v1317_v21, %v3055_v10 }
 0x8e6   :  { %v2891_v23 = vpop.eup %2890  ;;  %v1321_v24 = vadd.f32 1e-12, %v1319_v22 }
 0x8e7   :  { %v1323_v26 = vmul.f32 %v2891_v23, %v1320_v20  ;;  %vm1329_vm4 = vweird.f32 %v2891_v23 }
 0x8e8   :  { %2892 = vrsqrt.f32 %v1321_v24  ;;  %vm1330_vm6 = vmor %vm1328_vm5, %vm1329_vm4  ;;  %vm1338_vm12 = vweird.f32 %v1321_v24 }
 0x8e9   :  { %v1324_v28 = vmul.f32 %v2891_v23, %v1323_v26 }
 0x8eb   :  { %v1325_v25 = vmul.f32 0.5, %v1324_v28 }
 0x8ed   :  { %v1326_v29 = vsub.f32 1.5, %v1325_v25 }
 0x8ee   :  { %v2893_v30 = vpop.eup %2892 }
 0x8ef   :  { %v1327_v31 = vmul.f32 %v2891_v23, %v1326_v29  ;;  %v1333_v32 = vmul.f32 %v2893_v30, %v1321_v24  ;;  %vm1339_vm7 = vweird.f32 %v2893_v30 }
 0x8f0   :  { %vm1340_vm13 = vmor %vm1338_vm12, %vm1339_vm7  ;;  %vm2605_vm7 = vcmask 1041409  }
 0x8f1   :  { %v1334_v33 = vmul.f32 %v2893_v30, %v1333_v32  ;;  %v1331_v34 = vsel %vm1330_vm6, %v2891_v23, %v1327_v31 }
 0x8f2   :  { %v1342_v38 = vmul.f32 %v1331_v34, %v1308_v5 }
 0x8f3   :  { %v1335_v35 = vmul.f32 0.5, %v1334_v33 }
 0x8f4   :  { %v1347_v42 = vmul.f32 %v2849_v37, %v1342_v38 }
 0x8f5   :  { %v1336_v36 = vsub.f32 1.5, %v1335_v35 }
 0x8f6   :  { %v3460_v43 = vadd.f32 %v2850_v59, %v1347_v42 }
 0x8f7   :  { %v1337_v40 = vmul.f32 %v2893_v30, %v1336_v36 }
 0x8f9   :  { %v1341_v41 = vsel %vm1340_vm13, %v2893_v30, %v1337_v40 }
 0x8fa   :  { %v1343_v58 = vmul.f32 %v1341_v41, %v1309_v8 }
 0x8fc   :  { %v1348_v39 = vmul.f32 %v2849_v37, %v1343_v58 }
 0x8fe   :  { %v3462_v44 = vadd.f32 %v2850_v59, %v1348_v39 }
 0x900   :  { %v1354_v60 = vpack.c.bf16 %v3462_v44, %v3460_v43 }
 0x902   :  { %2724 = vmatmul.msk.bf16.vlgmr.msrb.gmra.mxu0 %vm62_vm0, %v1354_v60 }
 0x97f   :  { %v1389_v46 = vpop.f32.mrf.mxu0 }
 0x980   :  { %v1390_v51 = vadd.f32 %v2851_v45, %v1389_v46 }
 0x982   :  { %v1394_v52 = vpack.c.bf16 %v1390_v51, %v1390_v51 }
 0x984   :  { %1398 = vrot.lane.b32.xlu2 %v1394_v52, %s2950_s2  ;;  %v1405_v61 = vshrl.u32 %v1394_v52, 16 }
 0x987   :  { %v1391_v4 = vpop.f32.mrf.mxu0 }
 0x988   :  { %v1392_v53 = vadd.f32 %v2851_v45, %v1391_v4 }
 0x98a   :  { %v3471_v27 = vpack.c.bf16 %v1392_v53, %v1392_v53 }
 0x98c   :  { %1400 = vrot.lane.b32.xlu1 %v3471_v27, %s2950_s2  ;;  %1570 = vrot.lane.b32.xlu2 %v1394_v52, %s2949_s25  ;;  %v1411_v7 = vshrl.u32 %v3471_v27, 16 }
 0x994   :  { %1572 = vrot.lane.b32.xlu1 %v3471_v27, %s2949_s25 }
 0x9de   :  { %v3478_v54 = vpop.permute.xlu2 %1398 }
 0x9df   :  { %1574 = vrot.lane.b32.xlu0 %v3478_v54, %s2949_s25  ;;  %v1404_v49 = vpack.i.b16 %v3478_v54, %v1394_v52  ;;  %v1406_v48 = vshrl.u32 %v3478_v54, 16 }
 0x9e1   :  { %v1418_v17 = vperm.slane %v1404_v49, %v3103_v1  ;;  %v1407_v50 = vpack.i.b16 %v1406_v48, %v1405_v61 }
 0x9e3   :  { %v1419_v57 = vrot.slane %v1418_v17, 4  ;;  %v1437_v62 = vperm.slane %v1407_v50, %v3103_v1  ;;  %v1424_v5 = vperm.slane %v1418_v17, %v3111_v14 }
 0x9e5   :  { %v1420_v63 = vsel %vm188_vm8, 0, %v1419_v57  ;;  %v1438_v2 = vrot.slane %v1437_v62, 4  ;;  %v1429_v12 = vrot.slane %v1424_v5, 4  ;;  %v1443_v18 = vperm.slane %v1437_v62, %v3111_v14 }
 0x9e6   :  { %v1428_v0 = vperm.slane %v1420_v63, %v3111_v14  ;;  %v1571_v26 = vpop.permute.xlu2 %1570 }
 0x9e7   :  { %v1439_v47 = vsel %vm188_vm8, 0, %v1438_v2  ;;  %v1430_v20 = vsel %vm188_vm8, 0, %v1429_v12  ;;  %v1448_v24 = vrot.slane %v1443_v18, 4  ;;  %v1581_v32 = vshrl.u32 %v1571_v26, 16 }
 0x9e8   :  { %v1431_v3 = vrot.slane %v1428_v0, 4  ;;  %v1447_v9 = vperm.slane %v1439_v47, %v3111_v14 }
 0x9e9   :  { %v1449_v35 = vsel %vm188_vm8, 0, %v1448_v24 }
 0x9ea   :  { %v1432_v11 = vsel %vm188_vm8, 0, %v1431_v3  ;;  %v1450_v15 = vrot.slane %v1447_v9, 4  ;;  %v1490_v36 = vsel %vm188_vm8, %v1431_v3, %v1424_v5 }
 0x9eb   :  { %v1495_v16 = vrot.slane %v1432_v11, 4  ;;  %v1494_v51 = vperm.slane %v1490_v36, %v3103_v1 }
 0x9ec   :  { %v1451_v22 = vsel %vm188_vm8, 0, %v1450_v15  ;;  %v3513_v38 = vsel %vm188_vm8, %v1450_v15, %v1443_v18 }
 0x9ed   :  { %v1496_v23 = vsel %vm188_vm8, %v1495_v16, %v1430_v20  ;;  %v1512_v29 = vrot.slane %v1451_v22, 4 }
 0x9ee   :  { %v1500_v25 = vperm.slane %v1496_v23, %v3103_v1 }
 0x9ef   :  { %v1513_v58 = vsel %vm188_vm8, %v1512_v29, %v1449_v35 }
 0x9f0   :  { %v1501_v42 = vrot.slane %v1500_v25, 4  ;;  %v1517_v50 = vperm.slane %v1513_v58, %v3103_v1 }
 0x9f2   :  { %v3537_v0 = vsel %vm188_vm8, %v1501_v42, %v1494_v51 }
 0x9fe   :  { %v3482_v56 = vpop.permute.xlu1 %1400 }
 0x9ff   :  { %1576 = vrot.lane.b32.xlu2 %v3482_v56, %s2949_s25  ;;  %v1412_v55 = vshrl.u32 %v3482_v56, 16  ;;  %v1410_v6 = vpack.i.b16 %v3482_v56, %v3471_v27 }
 0xa01   :  { %v1413_v8 = vpack.i.b16 %v1412_v55, %v1411_v7  ;;  %v1456_v13 = vperm.slane %v1410_v6, %v3103_v1 }
 0xa03   :  { %v1475_v19 = vperm.slane %v1413_v8, %v3103_v1  ;;  %v1457_v21 = vrot.slane %v1456_v13, 4  ;;  %v3525_v4 = vperm.slane %v1456_v13, %v3111_v14 }
 0xa05   :  { %v1476_v28 = vrot.slane %v1475_v19, 4  ;;  %v1458_v30 = vsel %vm188_vm8, 0, %v1457_v21  ;;  %v3530_v49 = vperm.slane %v1475_v19, %v3111_v14  ;;  %v1467_v11 = vrot.slane %v3525_v4, 4 }
 0xa06   :  { %v1466_v40 = vperm.slane %v1458_v30, %v3111_v14  ;;  %v1573_v48 = vpop.permute.xlu1 %1572 }
 0xa07   :  { %1746 = vrot.lane.b32.xlu2 %v1394_v52, %s2951_s26  ;;  %v1477_v37 = vsel %vm188_vm8, 0, %v1476_v28  ;;  %v1511_v52 = vperm.slane %v3513_v38, %v3103_v1  ;;  %v1587_v5 = vshrl.u32 %v1573_v48, 16  ;;  %v1486_v12 = vrot.slane %v3530_v49, 4 }
 0xa08   :  { %v1485_v39 = vperm.slane %v1477_v37, %v3111_v14  ;;  %v3527_v53 = vrot.slane %v1466_v40, 4 }
 0xa0a   :  { %v3539_v2 = vrot.slane %v1485_v39, 4  ;;  %v1470_v8 = vsel %vm188_vm8, 0, %v3527_v53 }
 0xa0b   :  { %v1529_v29 = vrot.slane %v1470_v8, 4 }
 0xa0c   :  { %v1489_v20 = vsel %vm188_vm8, 0, %v3539_v2 }
 0xa0d   :  { %v1546_v37 = vrot.slane %v1489_v20, 4 }
 0xa51   :  { %v1575_v31 = vpop.permute.xlu0 %1574 }
 0xa52   :  { %v1580_v33 = vpack.i.b16 %v1575_v31, %v1571_v26  ;;  %v1582_v34 = vshrl.u32 %v1575_v31, 16 }
 0xa54   :  { %v1583_v41 = vpack.i.b16 %v1582_v34, %v1581_v32  ;;  %v1594_v59 = vperm.slane %v1580_v33, %v3103_v1 }
 0xa56   :  { %v1595_v60 = vrot.slane %v1594_v59, 4  ;;  %v1600_v45 = vperm.slane %v1594_v59, %v3111_v14  ;;  %v1613_v46 = vperm.slane %v1583_v41, %v3103_v1 }
 0xa58   :  { %v1596_v17 = vsel %vm188_vm8, 0, %v1595_v60  ;;  %v1614_v61 = vrot.slane %v1613_v46, 4  ;;  %v1619_v62 = vperm.slane %v1613_v46, %v3111_v14  ;;  %v1605_v3 = vrot.slane %v1600_v45, 4 }
 0xa59   :  { %v1604_v57 = vperm.slane %v1596_v17, %v3111_v14  ;;  %v1577_v63 = vpop.permute.xlu2 %1576  ;;  %v1468_v17 = vsel %vm188_vm8, 0, %v1467_v11 }
 0xa5a   :  { %v1615_v47 = vsel %vm188_vm8, 0, %v1614_v61  ;;  %v1586_v55 = vpack.i.b16 %v1577_v63, %v1573_v48  ;;  %v1588_v9 = vshrl.u32 %v1577_v63, 16  ;;  %v1624_v16 = vrot.slane %v1619_v62, 4 }
 0xa5b   :  { %v1607_v6 = vrot.slane %v1604_v57, 4  ;;  %v1623_v7 = vperm.slane %v1615_v47, %v3111_v14  ;;  %v1606_v21 = vsel %vm188_vm8, 0, %v1605_v3  ;;  %v1518_v48 = vrot.slane %v1517_v50, 4 }
 0xa5c   :  { %v1632_v13 = vperm.slane %v1586_v55, %v3103_v1  ;;  %v1589_v19 = vpack.i.b16 %v1588_v9, %v1587_v5  ;;  %v1625_v33 = vsel %vm188_vm8, 0, %v1624_v16  ;;  %v1487_v61 = vsel %vm188_vm8, 0, %v1486_v12 }
 0xa5d   :  { %v1608_v15 = vsel %vm188_vm8, 0, %v1607_v6  ;;  %v1626_v18 = vrot.slane %v1623_v7, 4  ;;  %v1666_v26 = vsel %vm188_vm8, %v1607_v6, %v1600_v45  ;;  %v1547_v3 = vsel %vm188_vm8, %v1546_v37, %v1487_v61 }
 0xa5e   :  { %v1671_v22 = vrot.slane %v1608_v15, 4  ;;  %v1633_v23 = vrot.slane %v1632_v13, 4  ;;  %v1638_v28 = vperm.slane %v1632_v13, %v3111_v14  ;;  %v1651_v25 = vperm.slane %v1589_v19, %v3103_v1 }
 0xa5f   :  { %v1627_v24 = vsel %vm188_vm8, 0, %v1626_v18  ;;  %v1670_v40 = vperm.slane %v1666_v26, %v3103_v1  ;;  %v1683_v45 = vsel %vm188_vm8, %v1626_v18, %v1619_v62  ;;  %v1530_v62 = vsel %vm188_vm8, %v1529_v29, %v1468_v17 }
 0xa60   :  { %v1672_v30 = vsel %vm188_vm8, %v1671_v22, %v1606_v21  ;;  %v1688_v31 = vrot.slane %v1627_v24, 4  ;;  %v1634_v32 = vsel %vm188_vm8, 0, %v1633_v23  ;;  %v1652_v36 = vrot.slane %v1651_v25, 4 }
 0xa61   :  { %v1676_v34 = vperm.slane %v1672_v30, %v3103_v1  ;;  %v1642_v35 = vperm.slane %v1634_v32, %v3111_v14  ;;  %v1657_v59 = vperm.slane %v1651_v25, %v3111_v14  ;;  %v1643_v42 = vrot.slane %v1638_v28, 4 }
 0xa62   :  { %v1689_v41 = vsel %vm188_vm8, %v1688_v31, %v1625_v33  ;;  %v1653_v39 = vsel %vm188_vm8, 0, %v1652_v36  ;;  %v1687_v7 = vperm.slane %v1683_v45, %v3103_v1  ;;  %v1551_v13 = vperm.slane %v1547_v3, %v3103_v1 }
 0xa63   :  { %v1645_v58 = vrot.slane %v1642_v35, 4  ;;  %v1677_v60 = vrot.slane %v1676_v34, 4  ;;  %v1661_v46 = vperm.slane %v1653_v39, %v3111_v14  ;;  %v1693_v51 = vperm.slane %v1689_v41, %v3103_v1 }
 0xa64   :  { %v1662_v47 = vrot.slane %v1657_v59, 4  ;;  %v1644_v6 = vsel %vm188_vm8, 0, %v1643_v42  ;;  %v1534_v19 = vperm.slane %v1530_v62, %v3103_v1  ;;  %v1519_v22 = vsel %vm188_vm8, %v1518_v48, %v1511_v52 }
 0xa65   :  { %v1646_v57 = vsel %vm188_vm8, 0, %v1645_v58  ;;  %v1678_v63 = vsel %vm188_vm8, %v1677_v60, %v1670_v40  ;;  %v1664_v55 = vrot.slane %v1661_v46, 4  ;;  %v1694_v50 = vrot.slane %v1693_v51, 4 }
 0xa66   :  { %v1705_v5 = vrot.slane %v1646_v57, 4  ;;  %v1700_v11 = vsel %vm188_vm8, %v1645_v58, %v1638_v28  ;;  %v1682_v12 = vperm.slane %v1678_v63, %v3111_v14  ;;  %v1663_v20 = vsel %vm188_vm8, 0, %v1662_v47 }
 0xa67   :  { %v1665_v9 = vsel %vm188_vm8, 0, %v1664_v55  ;;  %v1695_v18 = vsel %vm188_vm8, %v1694_v50, %v1687_v7  ;;  %v1704_v23 = vperm.slane %v1700_v11, %v3103_v1  ;;  %v1717_v24 = vsel %vm188_vm8, %v1664_v55, %v1657_v59 }
 0xa68   :  { %v1706_v8 = vsel %vm188_vm8, %v1705_v5, %v1644_v6  ;;  %v1722_v16 = vrot.slane %v1665_v9, 4  ;;  %v1699_v21 = vperm.slane %v1695_v18, %v3111_v14  ;;  %v1737_v29 = vshrl.u32 %v1682_v12, 16 }
 0xa69   :  { %v1710_v15 = vperm.slane %v1706_v8, %v3103_v1  ;;  %v1541_v32 = vsel %vm188_vm8, %v3539_v2, %v3530_v49  ;;  %v1523_v38 = vperm.slane %v1519_v22, %v3111_v14  ;;  %v1552_v33 = vrot.slane %v1551_v13, 4 }
 0xa6a   :  { %v1723_v26 = vsel %vm188_vm8, %v1722_v16, %v1663_v20  ;;  %v1736_v25 = vpack.i.b16 %v1699_v21, %v1682_v12  ;;  %v1738_v30 = vshrl.u32 %v1699_v21, 16  ;;  %v1721_v36 = vperm.slane %v1717_v24, %v3103_v1 }
 0xa6b   :  { %v1711_v28 = vrot.slane %v1710_v15, 4  ;;  %v1727_v31 = vperm.slane %v1723_v26, %v3103_v1  ;;  %v1524_v40 = vsel %vm188_vm8, %v3527_v53, %v3525_v4  ;;  %v1506_v41 = vperm.slane %v3537_v0, %v3111_v14 }
 0xa6c   :  { %v1926_v34 = vsel %vm691_vm9, %v1736_v25, 0  ;;  %v1739_v35 = vpack.i.b16 %v1738_v30, %v1737_v29  ;;  %v1535_v2 = vrot.slane %v1534_v19, 4  ;;  %v1545_v59 = vperm.slane %v1541_v32, %v3103_v1 }
 0xa6d   :  { %v1712_v52 = vsel %vm188_vm8, %v1711_v28, %v1704_v23  ;;  %v1728_v37 = vrot.slane %v1727_v31, 4  ;;  %1935 = vmatpush.bf16.xpose.msrb.mxu1 %v1926_v34  ;;  %v1528_v60 = vperm.slane %v1524_v40, %v3103_v1  ;;  %v1562_v45 = vshrl.u32 %v1523_v38, 16  ;;  %v1747_v28 = vpop.permute.xlu2 %1746 }
 0xa6e   :  { %v1716_v49 = vperm.slane %v1712_v52, %v3111_v14  ;;  %v1945_v42 = vsel %vm691_vm9, %v1739_v35, 0  ;;  %v1553_v4 = vsel %vm188_vm8, %v1552_v33, %v1545_v59  ;;  %v1560_v51 = vpack.i.b16 %v1523_v38, %v1506_v41 }
 0xa6f   :  { %v1729_v58 = vsel %vm188_vm8, %v1728_v37, %v1721_v36  ;;  %1954 = vmatpush.bf16.xpose.msrb.mxu2 %v1945_v42  ;;  %v1561_v48 = vshrl.u32 %v1506_v41, 16  ;;  %v1536_v17 = vsel %vm188_vm8, %v1535_v2, %v1528_v60  ;;  %v1557_v63 = vperm.slane %v1553_v4, %v3111_v14 }
 0xa70   :  { %v1733_v39 = vperm.slane %v1729_v58, %v3111_v14  ;;  %v1743_v46 = vshrl.u32 %v1716_v49, 16  ;;  %v1540_v55 = vperm.slane %v1536_v17, %v3111_v14 }
 0xa71   :  { %v1563_v3 = vpack.i.b16 %v1562_v45, %v1561_v48  ;;  %v1568_v5 = vshrl.u32 %v1557_v63, 16 }
 0xa72   :  { %v1742_v53 = vpack.i.b16 %v1733_v39, %v1716_v49  ;;  %v1744_v0 = vshrl.u32 %v1733_v39, 16  ;;  %v1566_v62 = vpack.i.b16 %v1557_v63, %v1540_v55  ;;  %v1567_v6 = vshrl.u32 %v1540_v55, 16 }
 0xa74   :  { %v1964_v61 = vsel %vm691_vm9, %v1742_v53, 0  ;;  %v1745_v57 = vpack.i.b16 %v1744_v0, %v1743_v46  ;;  %2725 = vmatmul.msk.bf16.vlgmr.msrb.gmra.mxu1 %vm691_vm9, %v1560_v51  ;;  %v1569_v7 = vpack.i.b16 %v1568_v5, %v1567_v6 }
 0xa75   :  { %1973 = vmatpush.bf16.xpose.msrb.mxu3 %v1964_v61 }
 0xa76   :  { %v1983_v47 = vsel %vm691_vm9, %v1745_v57, 0  ;;  %2726 = vmatmul.msk.bf16.vlgmr.msrb.gmra.mxu2 %vm691_vm9, %v1563_v3 }
 0xa77   :  { %1992 = vmatpush.bf16.xpose.msra.mxu0 %v1983_v47 }
 0xa7c   :  { %2727 = vmatmul.msk.bf16.vlgmr.msrb.gmra.mxu3 %vm691_vm9, %v1566_v62 }
 0xa7e   :  { %2728 = vmatmul.msk.bf16.vlgmr.msra.gmra.mxu0 %vm691_vm9, %v1569_v7 }
 0xaf1   :  { %v1937_v50 = vpop.f32.mrf.mxu1 }
 0xaf2   :  { %v1998_v9 = vmul.f32 0.25, %v1937_v50 }
 0xaf4   :  { %v2002_v11 = vsel %vm772_vm10, %v1998_v9, -inf }
 0xaf5   :  { %2003 = vmax.xlane.f32.xlu0 %v2002_v11 }
 0xaf9   :  { %v1939_v8 = vpop.f32.mrf.mxu1  ;;  %v1956_v12 = vpop.f32.mrf.mxu2 }
 0xafa   :  { %v1999_v13 = vmul.f32 0.25, %v1956_v12 }
 0xafb   :  { %v1994_v15 = vpop.f32.mrf.mxu0 }
 0xafc   :  { %v2001_v16 = vmul.f32 0.25, %v1994_v15  ;;  %v2005_v18 = vsel %vm772_vm10, %v1999_v13, -inf }
 0xafd   :  { %2006 = vmax.xlane.f32.xlu2 %v2005_v18 }
 0xafe   :  { %v2011_v19 = vsel %vm772_vm10, %v2001_v16, -inf }
 0xaff   :  { %2012 = vmax.xlane.f32.xlu1 %v2011_v19  ;;  %v1975_v20 = vpop.f32.mrf.mxu3 }
 0xb00   :  { %v2000_v21 = vmul.f32 0.25, %v1975_v20 }
 0xb01   :  { %v1958_v22 = vpop.f32.mrf.mxu2 }
 0xb02   :  { %v2008_v24 = vsel %vm772_vm10, %v2000_v21, -inf }
 0xb03   :  { %v1996_v23 = vpop.f32.mrf.mxu0 }
 0xb07   :  { %2009 = vmax.xlane.f32.xlu1 %v2008_v24  ;;  %v1977_v26 = vpop.f32.mrf.mxu3 }
 0xb09   :  { %1750 = vrot.lane.b32.xlu0 %v3478_v54, %s2951_s26 }
 0xb15   :  { %1752 = vrot.lane.b32.xlu2 %v3482_v56, %s2951_s26 }
 0xb20   :  { %1748 = vrot.lane.b32.xlu1 %v3471_v27, %s2951_s26  ;;  %v1757_v27 = vshrl.u32 %v1747_v28, 16 }
 0xb68   :  { %v2004_v25 = vpop.xlane.xlu0 %2003 }
 0xb69   :  { %v2014_v29 = vsub.f32 %v1998_v9, %v2004_v25 }
 0xb6b   :  { %v2018_v30 = vmul.f32 1.442695, %v2014_v29 }
 0xb6d   :  { %2894 = vpow2.f32 %v2018_v30 }
 0xb70   :  { %v2007_v31 = vpop.xlane.xlu2 %2006 }
 0xb71   :  { %v2015_v32 = vsub.f32 %v1999_v13, %v2007_v31 }
 0xb72   :  { %v2013_v38 = vpop.xlane.xlu1 %2012 }
 0xb73   :  { %v3632_v52 = vpop.eup %2894  ;;  %v2020_v33 = vmul.f32 1.442695, %v2015_v32  ;;  %v2017_v36 = vsub.f32 %v2001_v16, %v2013_v38 }
 0xb74   :  { %v2026_v54 = vsel %vm772_vm10, %v3632_v52, 0.0 }
 0xb75   :  { %2896 = vpow2.f32 %v2020_v33  ;;  %2027 = vadd.xlane.f32.xlu0 %v2026_v54  ;;  %v2024_v58 = vmul.f32 1.442695, %v2017_v36 }
 0xb7a   :  { %v2010_v56 = vpop.xlane.xlu1 %2009 }
 0xb7b   :  { %v2016_v34 = vsub.f32 %v2000_v21, %v2010_v56  ;;  %v3636_v35 = vpop.eup %2896  ;;  %v1751_v37 = vpop.permute.xlu0 %1750 }
 0xb7c   :  { %v1756_v41 = vpack.i.b16 %v1751_v37, %v1747_v28  ;;  %v1758_v49 = vshrl.u32 %v1751_v37, 16  ;;  %v2029_v2 = vsel %vm772_vm10, %v3636_v35, 0.0  ;;  %v1753_v21 = vpop.permute.xlu2 %1752 }
 0xb7d   :  { %v2022_v40 = vmul.f32 1.442695, %v2016_v34  ;;  %2030 = vadd.xlane.f32.xlu2 %v2029_v2  ;;  %v1764_v29 = vshrl.u32 %v1753_v21, 16 }
 0xb7e   :  { %v1759_v59 = vpack.i.b16 %v1758_v49, %v1757_v27  ;;  %v1770_v42 = vperm.slane %v1756_v41, %v3103_v1 }
 0xb7f   :  { %2898 = vpow2.f32 %v2022_v40 }
 0xb80   :  { %v1771_v39 = vrot.slane %v1770_v42, 4  ;;  %v1789_v60 = vperm.slane %v1759_v59, %v3103_v1  ;;  %v1776_v45 = vperm.slane %v1770_v42, %v3111_v14  ;;  %2900 = vpow2.f32 %v2024_v58 }
 0xb82   :  { %v1772_v4 = vsel %vm188_vm8, 0, %v1771_v39  ;;  %v1790_v53 = vrot.slane %v1789_v60, 4  ;;  %v1795_v0 = vperm.slane %v1789_v60, %v3111_v14  ;;  %v1781_v17 = vrot.slane %v1776_v45, 4 }
 0xb83   :  { %v1780_v46 = vperm.slane %v1772_v4, %v3111_v14 }
 0xb84   :  { %v1791_v48 = vsel %vm188_vm8, 0, %v1790_v53  ;;  %v1800_v47 = vrot.slane %v1795_v0, 4  ;;  %v1782_v62 = vsel %vm188_vm8, 0, %v1781_v17 }
 0xb85   :  { %v3646_v51 = vpop.eup %2898  ;;  %v1783_v61 = vrot.slane %v1780_v46, 4  ;;  %v1799_v57 = vperm.slane %v1791_v48, %v3111_v14 }
 0xb86   :  { %v2032_v63 = vsel %vm772_vm10, %v3646_v51, 0.0  ;;  %v3655_v7 = vpop.eup %2900  ;;  %v1801_v8 = vsel %vm188_vm8, 0, %v1800_v47 }
 0xb87   :  { %2033 = vadd.xlane.f32.xlu1 %v2032_v63  ;;  %v1784_v3 = vsel %vm188_vm8, 0, %v1783_v61  ;;  %v1802_v55 = vrot.slane %v1799_v57, 4  ;;  %v1842_v50 = vsel %vm188_vm8, %v1783_v61, %v1776_v45  ;;  %v2035_v18 = vsel %vm772_vm10, %v3655_v7, 0.0 }
 0xb88   :  { %v1847_v5 = vrot.slane %v1784_v3, 4  ;;  %v1846_v16 = vperm.slane %v1842_v50, %v3103_v1 }
 0xb89   :  { %v1803_v6 = vsel %vm188_vm8, 0, %v1802_v55  ;;  %v1859_v13 = vsel %vm188_vm8, %v1802_v55, %v1795_v0 }
 0xb8a   :  { %v1848_v9 = vsel %vm188_vm8, %v1847_v5, %v1782_v62  ;;  %v1864_v11 = vrot.slane %v1803_v6, 4  ;;  %v1863_v23 = vperm.slane %v1859_v13, %v3103_v1 }
 0xb8b   :  { %v1852_v12 = vperm.slane %v1848_v9, %v3103_v1 }
 0xb8c   :  { %v1865_v15 = vsel %vm188_vm8, %v1864_v11, %v1801_v8 }
 0xb8d   :  { %v1853_v19 = vrot.slane %v1852_v12, 4  ;;  %v1869_v20 = vperm.slane %v1865_v15, %v3103_v1 }
 0xb8f   :  { %2036 = vadd.xlane.f32.xlu1 %v2035_v18  ;;  %v1854_v22 = vsel %vm188_vm8, %v1853_v19, %v1846_v16  ;;  %v1870_v24 = vrot.slane %v1869_v20, 4 }
 0xb90   :  { %v1858_v28 = vperm.slane %v1854_v22, %v3111_v14 }
 0xb91   :  { %v1871_v25 = vsel %vm188_vm8, %v1870_v24, %v1863_v23 }
 0xb92   :  { %v1749_v26 = vpop.permute.xlu1 %1748  ;;  %v1875_v32 = vperm.slane %v1871_v25, %v3111_v14  ;;  %v1913_v34 = vshrl.u32 %v1858_v28, 16 }
 0xb93   :  { %v1762_v30 = vpack.i.b16 %v1753_v21, %v1749_v26  ;;  %v1763_v31 = vshrl.u32 %v1749_v26, 16 }
 0xb94   :  { %v1912_v54 = vpack.i.b16 %v1875_v32, %v1858_v28  ;;  %v1914_v56 = vshrl.u32 %v1875_v32, 16 }
 0xb95   :  { %v1765_v38 = vpack.i.b16 %v1764_v29, %v1763_v31  ;;  %v1808_v33 = vperm.slane %v1762_v30, %v3103_v1 }
 0xb96   :  { %v2054_v37 = vsel %vm824_vm11, %v1912_v54, 0  ;;  %v1915_v41 = vpack.i.b16 %v1914_v56, %v1913_v34 }
 0xb97   :  { %v1809_v27 = vrot.slane %v1808_v33, 4  ;;  %v1827_v36 = vperm.slane %v1765_v38, %v3103_v1  ;;  %v1814_v40 = vperm.slane %v1808_v33, %v3111_v14  ;;  %2063 = vmatpush.bf16.msra.mxu1 %v2054_v37 }
 0xb98   :  { %v2073_v58 = vsel %vm824_vm11, %v1915_v41, 0 }
 0xb99   :  { %v1810_v49 = vsel %vm188_vm8, 0, %v1809_v27  ;;  %v1828_v2 = vrot.slane %v1827_v36, 4  ;;  %v1833_v42 = vperm.slane %v1827_v36, %v3111_v14  ;;  %2082 = vmatpush.bf16.msra.mxu2 %v2073_v58  ;;  %v1819_v60 = vrot.slane %v1814_v40, 4 }
 0xb9a   :  { %v1818_v59 = vperm.slane %v1810_v49, %v3111_v14 }
 0xb9b   :  { %v1829_v39 = vsel %vm188_vm8, 0, %v1828_v2  ;;  %v1838_v46 = vrot.slane %v1833_v42, 4  ;;  %v1820_v17 = vsel %vm188_vm8, 0, %v1819_v60 }
 0xb9c   :  { %v1821_v45 = vrot.slane %v1818_v59, 4  ;;  %v1837_v4 = vperm.slane %v1829_v39, %v3111_v14 }
 0xb9d   :  { %v1839_v47 = vsel %vm188_vm8, 0, %v1838_v46 }
 0xb9e   :  { %v1822_v53 = vsel %vm188_vm8, 0, %v1821_v45  ;;  %v1840_v0 = vrot.slane %v1837_v4, 4  ;;  %v1876_v57 = vsel %vm188_vm8, %v1821_v45, %v1814_v40 }
 0xb9f   :  { %v1881_v48 = vrot.slane %v1822_v53, 4  ;;  %v1880_v6 = vperm.slane %v1876_v57, %v3103_v1 }
 0xba0   :  { %v1841_v61 = vsel %vm188_vm8, 0, %v1840_v0  ;;  %v1893_v5 = vsel %vm188_vm8, %v1840_v0, %v1833_v42  ;;  %v2813_v0 = vld [vmem:[%s3861_s5 + $0x18] sm:$0xff] }
 0xba1   :  { %v1882_v63 = vsel %vm188_vm8, %v1881_v48, %v1820_v17  ;;  %v1898_v3 = vrot.slane %v1841_v61, 4  ;;  %v1897_v8 = vperm.slane %v1893_v5, %v3103_v1  ;;  %2348 = vmatpush.bf16.msrb.mxu1 %v2813_v0 }
 0xba2   :  { %v1886_v55 = vperm.slane %v1882_v63, %v3103_v1 }
 0xba3   :  { %v1899_v62 = vsel %vm188_vm8, %v1898_v3, %v1839_v47 }
 0xba4   :  { %v1887_v50 = vrot.slane %v1886_v55, 4  ;;  %v1903_v9 = vperm.slane %v1899_v62, %v3103_v1 }
 0xba6   :  { %v1888_v11 = vsel %vm188_vm8, %v1887_v50, %v1880_v6  ;;  %v1904_v12 = vrot.slane %v1903_v9, 4 }
 0xba7   :  { %v1892_v13 = vperm.slane %v1888_v11, %v3111_v14 }
 0xba8   :  { %v1905_v15 = vsel %vm188_vm8, %v1904_v12, %v1897_v8 }
 0xba9   :  { %v1909_v16 = vperm.slane %v1905_v15, %v3111_v14  ;;  %v1919_v19 = vshrl.u32 %v1892_v13, 16 }
 0xbab   :  { %v1918_v18 = vpack.i.b16 %v1909_v16, %v1892_v13  ;;  %v1920_v20 = vshrl.u32 %v1909_v16, 16 }
 0xbad   :  { %v2092_v21 = vsel %vm824_vm11, %v1918_v18, 0  ;;  %v1921_v22 = vpack.i.b16 %v1920_v20, %v1919_v19 }
 0xbae   :  { %2101 = vmatpush.bf16.msra.mxu3 %v2092_v21 }
 0xbaf   :  { %v2111_v23 = vsel %vm824_vm11, %v1921_v22, 0 }
 0xbb0   :  { %2120 = vmatpush.bf16.msrb.mxu0 %v2111_v23 }
 0xbe8   :  { %v2028_v24 = vpop.xlane.xlu0 %2027 }
 0xbe9   :  { %2902 = vrcp.f32 %v2028_v24 }
 0xbef   :  { %v2903_v26 = vpop.eup %2902 }
 0xbf0   :  { %v2042_v28 = vmul.f32 %v2903_v26, %v3632_v52  ;;  %v2031_v25 = vpop.xlane.xlu2 %2030 }
 0xbf1   :  { %2904 = vrcp.f32 %v2031_v25 }
 0xbf2   :  { %v2046_v29 = vpack.c.bf16 %v2042_v28, %v2042_v28 }
 0xbf4   :  { %2729 = vmatmul.msk.bf16.vlgmr.msra.gmra.mxu1 %vm772_vm10, %v2046_v29 }
 0xbf7   :  { %v2905_v30 = vpop.eup %2904 }
 0xbf8   :  { %v2043_v31 = vmul.f32 %v2905_v30, %v3636_v35 }
 0xbfa   :  { %v2034_v32 = vpop.xlane.xlu1 %2033  ;;  %v2047_v38 = vpack.c.bf16 %v2043_v31, %v2043_v31 }
 0xbfb   :  { %2906 = vrcp.f32 %v2034_v32 }
 0xbfc   :  { %2730 = vmatmul.msk.bf16.vlgmr.msra.gmra.mxu2 %vm772_vm10, %v2047_v38 }
 0xc01   :  { %v2907_v33 = vpop.eup %2906 }
 0xc02   :  { %v2044_v54 = vmul.f32 %v2907_v33, %v3646_v51  ;;  %v2037_v56 = vpop.xlane.xlu1 %2036 }
 0xc03   :  { %2908 = vrcp.f32 %v2037_v56 }
 0xc04   :  { %v2048_v34 = vpack.c.bf16 %v2044_v54, %v2044_v54 }
 0xc06   :  { %2731 = vmatmul.msk.bf16.vlgmr.msra.gmra.mxu3 %vm772_vm10, %v2048_v34 }
 0xc09   :  { %v2909_v52 = vpop.eup %2908 }
 0xc0a   :  { %v2045_v27 = vmul.f32 %v2909_v52, %v3655_v7 }
 0xc0c   :  { %v2049_v36 = vpack.c.bf16 %v2045_v27, %v2045_v27 }
 0xc0e   :  { %2732 = vmatmul.msk.bf16.vlgmr.msrb.gmra.mxu0 %vm772_vm10, %v2049_v36 }
 0xc71   :  { %v2065_v35 = vpop.f32.mrf.mxu1 }
 0xc72   :  { %v2126_v37 = vrot.slane %v2065_v35, 4  ;;  %v2131_v49 = vperm.slane %v2065_v35, %v3103_v1 }
 0xc74   :  { %v2127_v41 = vsel %vm188_vm8, 0.0, %v2126_v37  ;;  %v2148_v59 = vrot.slane %v2131_v49, 4 }
 0xc75   :  { %v2135_v51 = vperm.slane %v2127_v41, %v3103_v1 }
 0xc77   :  { %v2160_v45 = vrot.slane %v2135_v51, 4 }
 0xc79   :  { %v2067_v40 = vpop.f32.mrf.mxu1 }
 0xc7f   :  { %v2084_v2 = vpop.f32.mrf.mxu2 }
 0xc80   :  { %v2136_v42 = vrot.slane %v2084_v2, 4  ;;  %v2141_v58 = vperm.slane %v2084_v2, %v3103_v1 }
 0xc82   :  { %v2137_v39 = vsel %vm188_vm8, 0.0, %v2136_v42  ;;  %v2146_v7 = vrot.slane %v2141_v58, 4  ;;  %v2149_v60 = vsel %vm188_vm8, %v2141_v58, %v2148_v59 }
 0xc83   :  { %v2145_v4 = vperm.slane %v2137_v39, %v3103_v1  ;;  %v2157_v53 = vperm.slane %v2149_v60, %v3111_v14 }
 0xc84   :  { %v2147_v46 = vsel %vm188_vm8, %v2146_v7, %v2131_v49 }
 0xc85   :  { %v2153_v48 = vperm.slane %v2147_v46, %v3111_v14  ;;  %v2158_v17 = vrot.slane %v2145_v4, 4  ;;  %v2161_v61 = vsel %vm188_vm8, %v2145_v4, %v2160_v45  ;;  %v2172_v57 = vrot.slane %v2157_v53, 4 }
 0xc86   :  { %v2169_v63 = vperm.slane %v2161_v61, %v3111_v14 }
 0xc87   :  { %v2159_v3 = vsel %vm188_vm8, %v2158_v17, %v2135_v51  ;;  %v2170_v47 = vrot.slane %v2153_v48, 4  ;;  %v2173_v55 = vsel %vm188_vm8, 0.0, %v2172_v57  ;;  %v2086_v5 = vpop.f32.mrf.mxu2  ;;  %v2230_v38 = vsel %vm188_vm8, %v2172_v57, %v2153_v48 }
 0xc88   :  { %v2165_v62 = vperm.slane %v2159_v3, %v3111_v14  ;;  %v2176_v6 = vrot.slane %v2169_v63, 4  ;;  %v2235_v50 = vrot.slane %v2173_v55, 4  ;;  %v2234_v49 = vperm.slane %v2230_v38, %v3103_v1 }
 0xc89   :  { %v2103_v9 = vpop.f32.mrf.mxu3  ;;  %v2171_v11 = vsel %vm188_vm8, 0.0, %v2170_v47 }
 0xc8a   :  { %v2178_v8 = vrot.slane %v2103_v9, 4  ;;  %v2183_v12 = vperm.slane %v2103_v9, %v3103_v1  ;;  %v2174_v13 = vrot.slane %v2165_v62, 4  ;;  %v2177_v15 = vsel %vm188_vm8, 0.0, %v2176_v6 }
 0xc8b   :  { %v2236_v16 = vsel %vm188_vm8, %v2235_v50, %v2171_v11  ;;  %v2122_v18 = vpop.f32.mrf.mxu0  ;;  %v2246_v20 = vrot.slane %v2177_v15, 4  ;;  %v2241_v34 = vsel %vm188_vm8, %v2176_v6, %v2165_v62 }
 0xc8c   :  { %v2240_v19 = vperm.slane %v2236_v16, %v3103_v1  ;;  %v2179_v21 = vsel %vm188_vm8, 0.0, %v2178_v8  ;;  %v2200_v22 = vrot.slane %v2183_v12, 4  ;;  %v2175_v23 = vsel %vm188_vm8, 0.0, %v2174_v13 }
 0xc8d   :  { %v2187_v24 = vperm.slane %v2179_v21, %v3103_v1  ;;  %v2188_v26 = vrot.slane %v2122_v18, 4  ;;  %v2193_v28 = vperm.slane %v2122_v18, %v3103_v1  ;;  %v2247_v25 = vsel %vm188_vm8, %v2246_v20, %v2175_v23 }
 0xc8e   :  { %v2251_v56 = vperm.slane %v2247_v25, %v3103_v1  ;;  %v2252_v52 = vrot.slane %v2240_v19, 4  ;;  %v2245_v7 = vperm.slane %v2241_v34, %v3103_v1 }
 0xc8f   :  { %v2212_v29 = vrot.slane %v2187_v24, 4  ;;  %v2189_v30 = vsel %vm188_vm8, 0.0, %v2188_v26  ;;  %v2198_v31 = vrot.slane %v2193_v28, 4  ;;  %v2201_v32 = vsel %vm188_vm8, %v2193_v28, %v2200_v22 }
 0xc90   :  { %v2197_v33 = vperm.slane %v2189_v30, %v3103_v1  ;;  %v2209_v54 = vperm.slane %v2201_v32, %v3111_v14  ;;  %v2258_v59 = vrot.slane %v2251_v56, 4  ;;  %v2253_v0 = vsel %vm188_vm8, %v2252_v52, %v2234_v49 }
 0xc91   :  { %v2199_v27 = vsel %vm188_vm8, %v2198_v31, %v2183_v12  ;;  %v2105_v36 = vpop.f32.mrf.mxu3  ;;  %v2257_v62 = vperm.slane %v2253_v0, %v3111_v14 }
 0xc92   :  { %v2205_v35 = vperm.slane %v2199_v27, %v3111_v14  ;;  %v2210_v37 = vrot.slane %v2197_v33, 4  ;;  %v2213_v40 = vsel %vm188_vm8, %v2197_v33, %v2212_v29  ;;  %v2224_v41 = vrot.slane %v2209_v54, 4  ;;  %v2852_v33 = vld [vmem:[%s3862_s6 + $0x1] ss:$0 sm:$0xff] }
 0xc93   :  { %v2221_v51 = vperm.slane %v2213_v40, %v3111_v14  ;;  %v2124_v2 = vpop.f32.mrf.mxu0  ;;  %v2259_v48 = vsel %vm188_vm8, %v2258_v59, %v2245_v7  ;;  %v2266_v19 = vrot.slane %v2257_v62, 4 }
 0xc94   :  { %v2211_v42 = vsel %vm188_vm8, %v2210_v37, %v2187_v24  ;;  %v2222_v58 = vrot.slane %v2205_v35, 4  ;;  %v2225_v39 = vsel %vm188_vm8, 0.0, %v2224_v41  ;;  %v2268_v46 = vsel %vm188_vm8, %v2224_v41, %v2205_v35 }
 0xc95   :  { %v2217_v60 = vperm.slane %v2211_v42, %v3111_v14  ;;  %v2228_v45 = vrot.slane %v2221_v51, 4  ;;  %v2273_v4 = vrot.slane %v2225_v39, 4  ;;  %v2263_v47 = vperm.slane %v2259_v48, %v3111_v14 }
 0xc96   :  { %v2223_v53 = vsel %vm188_vm8, 0.0, %v2222_v58  ;;  %v2272_v5 = vperm.slane %v2268_v46, %v3103_v1 }
 0xc97   :  { %v2226_v17 = vrot.slane %v2217_v60, 4  ;;  %v2229_v61 = vsel %vm188_vm8, 0.0, %v2228_v45  ;;  %v2274_v57 = vsel %vm188_vm8, %v2273_v4, %v2223_v53  ;;  %v2279_v6 = vsel %vm188_vm8, %v2228_v45, %v2217_v60  ;;  %v2815_v60 = vld [vmem:[%s3865_s9 + $0x18] sm:$0xff]  ;;  %v2814_v4 = vld [vmem:[%s3865_s9 + $0x10] sm:$0xff]  ;;  %s2647_s9 = sshll.u32 %s3873_s17, 4  ;;  %s2648_s9 = int_to_ptr.hbm [resolvable:$true] %s2647_s9 }
 0xc98   :  { %v2278_v63 = vperm.slane %v2274_v57, %v3103_v1  ;;  %v2284_v3 = vrot.slane %v2229_v61, 4  ;;  %v2264_v11 = vrot.slane %v2263_v47, 4  ;;  %v2283_v15 = vperm.slane %v2279_v6, %v3103_v1  ;;  %2448 = vmatpush.bf16.msrb.mxu2 %v2815_v60 }
 0xc99   :  { %v2227_v55 = vsel %vm188_vm8, 0.0, %v2226_v17  ;;  %v2267_v23 = vsel %vm188_vm8, %v2263_v47, %v2266_v19 }
 0xc9a   :  { %v2290_v50 = vrot.slane %v2278_v63, 4  ;;  %v2285_v9 = vsel %vm188_vm8, %v2284_v3, %v2227_v55  ;;  %v2265_v13 = vsel %vm188_vm8, %v2264_v11, %v2257_v62 }
 0xc9b   :  { %v2289_v8 = vperm.slane %v2285_v9, %v3103_v1  ;;  %v2812_v1 = vld [vmem:[%s3861_s5 + $0x10] sm:$0xff]  ;;  %v2853_v9 = vld [vmem:[%s3863_s7 + $0x1] ss:$0 sm:$0xff] }
 0xc9c   :  { %v2291_v12 = vsel %vm188_vm8, %v2290_v50, %v2272_v5  ;;  %2349 = vmatpush.bf16.msrb.mxu1 %v2812_v1  ;;  %2449 = vmatpush.bf16.msrb.mxu2 %v2814_v4  ;;  %v2816_v1 = vld [vmem:[%s3867_s11 + $0x20] sm:$0xff] }
 0xc9d   :  { %v2295_v16 = vperm.slane %v2291_v12, %v3111_v14  ;;  %v2296_v18 = vrot.slane %v2289_v8, 4 }
 0xc9f   :  { %v2297_v20 = vsel %vm188_vm8, %v2296_v18, %v2283_v15  ;;  %v2304_v21 = vrot.slane %v2295_v16, 4 }
 0xca0   :  { %v2301_v22 = vperm.slane %v2297_v20, %v3111_v14 }
 0xca2   :  { %v2302_v24 = vrot.slane %v2301_v22, 4  ;;  %v2305_v26 = vsel %vm188_vm8, %v2301_v22, %v2304_v21  ;;  %v2819_v22 = vld [vmem:[%s3867_s11 + $0x38] sm:$0xff] }
 0xca3   :  { %v2836_v28 = vpack.i.bf16 %v2305_v26, %v2267_v23  ;;  %2520 = vmatpush.bf16.msrb.mxu3 %v2819_v22  ;;  %v2818_v23 = vld [vmem:[%s3867_s11 + $0x30] sm:$0xff]  ;;  %v2817_v26 = vld [vmem:[%s3867_s11 + $0x28] sm:$0xff] }
 0xca4   :  { %v2303_v25 = vsel %vm188_vm8, %v2302_v24, %v2295_v16  ;;  %v2855_v24 = vld [vmem:[%s3866_s10 + $0x1] ss:$0 sm:$0xff] }
 0xca5   :  { %2837 = vrot.lane.b32.xlu2 %v2836_v28, %s2954_s29 }
 0xca7   :  { %2521 = vmatpush.bf16.msrb.mxu3 %v2818_v23 }
 0xcab   :  { %2522 = vmatpush.bf16.msrb.mxu3 %v2817_v26 }
 0xcaf   :  { %2523 = vmatpush.bf16.msrb.mxu3 %v2816_v1  ;;  %v2858_v1 = vld [vmem:[%s3870_s14 + $0x1] ss:$0 sm:$0xff] }
 0xcff   :  { %v2838_v29 = vpop.permute.xlu2 %2837 }
 0xd00   :  { %v2840_v30 = vunpack.i.h.bf16 %v2838_v29  ;;  %v2839_v31 = vunpack.i.l.bf16 %v2838_v29 }
 0xd02   :  { %v2315_v14 = vsel %vm691_vm9, %v2303_v25, %v2840_v30  ;;  %v2314_v32 = vsel %vm691_vm9, %v2265_v13, %v2839_v31  ;;  %v2854_v13 = vld [vmem:[%s3864_s8 + $0x1] ss:$0 sm:$0xff] }
 0xd03   :  { %v2316_v38 = vpack.c.bf16 %v2315_v14, %v2314_v32 }
 0xd05   :  { %2746 = vmatmul.msk.bf16.vlgmr.msrb.gmra.mxu1 %vm62_vm0, %v2316_v38 }
 0xd82   :  { %v2351_v54 = vpop.f32.mrf.mxu1 }
 0xd83   :  { %v2352_v56 = vadd.f32 %v2852_v33, %v2351_v54 }
 0xd85   :  { %v2356_v34 = vadd.f32 %v2352_v56, %v3460_v43 }
 0xd87   :  { %v2362_v52 = vsel %vm62_vm0, %v2356_v34, 0.0 }
 0xd88   :  { %2363 = vadd.xlane.f32.xlu0 %v2362_v52 }
 0xd8a   :  { %v2353_v27 = vpop.f32.mrf.mxu1 }
 0xd8b   :  { %v2354_v36 = vadd.f32 %v2852_v33, %v2353_v27 }
 0xd8d   :  { %v2357_v35 = vadd.f32 %v2354_v36, %v3462_v44 }
 0xd8f   :  { %v2365_v37 = vsel %vm62_vm0, %v2357_v35, 0.0 }
 0xd90   :  { %2366 = vadd.xlane.f32.xlu1 %v2365_v37 }
 0xdfb   :  { %v2364_v40 = vpop.xlane.xlu0 %2363 }
 0xdfc   :  { %v2368_v41 = vmul.f32 %v2364_v40, %v3055_v10 }
 0xdfe   :  { %v2370_v49 = vsub.f32 %v2356_v34, %v2368_v41 }
 0xe00   :  { %v2372_v51 = vmul.f32 %v2370_v49, %v2370_v49 }
 0xe02   :  { %v2374_v2 = vsel %vm62_vm0, %v2372_v51, 0.0 }
 0xe03   :  { %v2367_v59 = vpop.xlane.xlu1 %2366  ;;  %2375 = vadd.xlane.f32.xlu0 %v2374_v2 }
 0xe04   :  { %v2369_v43 = vmul.f32 %v2367_v59, %v3055_v10 }
 0xe06   :  { %v2371_v42 = vsub.f32 %v2357_v35, %v2369_v43  ;;  %v2856_v43 = vld [vmem:[%s3868_s12 + $0x1] ss:$0 sm:$0xff] }
 0xe08   :  { %v2373_v58 = vmul.f32 %v2371_v42, %v2371_v42 }
 0xe0a   :  { %v2377_v39 = vsel %vm62_vm0, %v2373_v58, 0.0 }
 0xe0b   :  { %2378 = vadd.xlane.f32.xlu1 %v2377_v39 }
 0xe76   :  { %v2376_v44 = vpop.xlane.xlu0 %2375 }
 0xe77   :  { %v2380_v7 = vmul.f32 %v2376_v44, %v3055_v10 }
 0xe79   :  { %v2382_v45 = vadd.f32 1e-12, %v2380_v7 }
 0xe7b   :  { %2910 = vrsqrt.f32 %v2382_v45  ;;  %vm2390_vm9 = vweird.f32 %v2382_v45 }
 0xe7e   :  { %v2379_v53 = vpop.xlane.xlu1 %2378 }
 0xe7f   :  { %v2381_v46 = vmul.f32 %v2379_v53, %v3055_v10 }
 0xe81   :  { %v2911_v0 = vpop.eup %2910  ;;  %v2383_v48 = vadd.f32 1e-12, %v2381_v46 }
 0xe82   :  { %v2385_v17 = vmul.f32 %v2911_v0, %v2382_v45  ;;  %vm2391_vm8 = vweird.f32 %v2911_v0 }
 0xe83   :  { %2912 = vrsqrt.f32 %v2383_v48  ;;  %vm2392_vm10 = vmor %vm2390_vm9, %vm2391_vm8  ;;  %vm2400_vm14 = vweird.f32 %v2383_v48 }
 0xe84   :  { %v2386_v61 = vmul.f32 %v2911_v0, %v2385_v17 }
 0xe86   :  { %v2387_v57 = vmul.f32 0.5, %v2386_v61 }
 0xe88   :  { %v2388_v63 = vsub.f32 1.5, %v2387_v57 }
 0xe89   :  { %v2913_v3 = vpop.eup %2912 }
 0xe8a   :  { %v2389_v47 = vmul.f32 %v2911_v0, %v2388_v63  ;;  %v2395_v55 = vmul.f32 %v2913_v3, %v2383_v48  ;;  %vm2401_vm11 = vweird.f32 %v2913_v3 }
 0xe8b   :  { %vm2402_vm15 = vmor %vm2400_vm14, %vm2401_vm11 }
 0xe8c   :  { %v2396_v5 = vmul.f32 %v2913_v3, %v2395_v55  ;;  %v2393_v62 = vsel %vm2392_vm10, %v2911_v0, %v2389_v47 }
 0xe8d   :  { %v2404_v11 = vmul.f32 %v2393_v62, %v2370_v49 }
 0xe8e   :  { %v2397_v6 = vmul.f32 0.5, %v2396_v5 }
 0xe8f   :  { %v2409_v15 = vmul.f32 %v2853_v9, %v2404_v11 }
 0xe90   :  { %v2398_v50 = vsub.f32 1.5, %v2397_v6 }
 0xe91   :  { %v2414_v19 = vadd.f32 %v2854_v13, %v2409_v15 }
 0xe92   :  { %v2399_v8 = vmul.f32 %v2913_v3, %v2398_v50 }
 0xe94   :  { %v2403_v12 = vsel %vm2402_vm15, %v2913_v3, %v2399_v8 }
 0xe95   :  { %v2405_v16 = vmul.f32 %v2403_v12, %v2371_v42  ;;  %v2820_v12 = vld [vmem:[%s3871_s15] sm:$0xff] }
 0xe97   :  { %v2410_v18 = vmul.f32 %v2853_v9, %v2405_v16  ;;  %v2821_v9 = vld [vmem:[%s3871_s15 + $0x8] sm:$0xff] }
 0xe98   :  { %2629 = vmatpush.bf16.msra.mxu0 %v2821_v9 }
 0xe99   :  { %v2415_v20 = vadd.f32 %v2854_v13, %v2410_v18 }
 0xe9b   :  { %v2416_v21 = vpack.c.bf16 %v2415_v20, %v2414_v19 }
 0xe9c   :  { %2630 = vmatpush.bf16.msra.mxu0 %v2820_v12 }
 0xe9d   :  { %2762 = vmatmul.msk.bf16.vlgmr.msrb.gmra.mxu2 %vm62_vm0, %v2416_v21 }
 0xf20   :  { %v2451_v28 = vpop.f32.mrf.mxu2 }
 0xf21   :  { %v2452_v25 = vadd.f32 %v2855_v24, %v2451_v28 }
 0xf23   :  { %v2456_v29 = vmul.f32 %v2452_v25, %v2452_v25 }
 0xf25   :  { %v2458_v30 = vmul.f32 %v2456_v29, %v2452_v25 }
 0xf27   :  { %v2460_v31 = vmul.f32 0.044715, %v2458_v30 }
 0xf28   :  { %v2453_v14 = vpop.f32.mrf.mxu2 }
 0xf29   :  { %v2462_v32 = vadd.f32 %v2460_v31, %v2452_v25  ;;  %v2454_v38 = vadd.f32 %v2855_v24, %v2453_v14  ;;  %v2857_v24 = vld [vmem:[%s3869_s13 + $0x1] ss:$0 sm:$0xff] }
 0xf2b   :  { %v2464_v33 = vmul.f32 0.7978846, %v2462_v32  ;;  %v2457_v54 = vmul.f32 %v2454_v38, %v2454_v38 }
 0xf2d   :  { %v2459_v56 = vmul.f32 %v2457_v54, %v2454_v38  ;;  %2914 = vtanh.f32 %v2464_v33 }
 0xf2f   :  { %v2461_v34 = vmul.f32 0.044715, %v2459_v56 }
 0xf31   :  { %v2463_v52 = vadd.f32 %v2461_v34, %v2454_v38 }
 0xf33   :  { %v2465_v27 = vmul.f32 0.7978846, %v2463_v52  ;;  %v2915_v36 = vpop.eup %2914 }
 0xf34   :  { %v2468_v35 = vadd.f32 1.0, %v2915_v36 }
 0xf35   :  { %2916 = vtanh.f32 %v2465_v27 }
 0xf36   :  { %v2470_v40 = vmul.f32 0.5, %v2468_v35  ;;  %v2859_v35 = vld [vmem:[%s3872_s16] ss:$0 sm:$0xff] }
 0xf38   :  { %v2472_v51 = vmul.f32 %v2470_v40, %v2452_v25 }
 0xf3b   :  { %v2917_v37 = vpop.eup %2916 }
 0xf3c   :  { %v2469_v41 = vadd.f32 1.0, %v2917_v37 }
 0xf3e   :  { %v2471_v49 = vmul.f32 0.5, %v2469_v41 }
 0xf40   :  { %v2473_v2 = vmul.f32 %v2471_v49, %v2454_v38 }
 0xf42   :  { %v2474_v59 = vpack.c.bf16 %v2473_v2, %v2472_v51 }
 0xf44   :  { %2788 = vmatmul.msk.bf16.vlgmr.msrb.gmra.mxu3 %vm1278_vm3, %v2474_v59 }
 0xfc7   :  { %v2525_v42 = vpop.f32.mrf.mxu3 }
 0xfc8   :  { %v2526_v58 = vadd.f32 %v2856_v43, %v2525_v42 }
 0xfca   :  { %v2530_v39 = vadd.f32 %v2526_v58, %v2414_v19 }
 0xfcc   :  { %v2536_v44 = vsel %vm62_vm0, %v2530_v39, 0.0 }
 0xfcd   :  { %2537 = vadd.xlane.f32.xlu1 %v2536_v44 }
 0xfcf   :  { %v2527_v7 = vpop.f32.mrf.mxu3 }
 0xfd0   :  { %v2528_v60 = vadd.f32 %v2856_v43, %v2527_v7 }
 0xfd2   :  { %v2531_v45 = vadd.f32 %v2528_v60, %v2415_v20 }
 0xfd4   :  { %v2539_v4 = vsel %vm62_vm0, %v2531_v45, 0.0 }
 0xfd5   :  { %2540 = vadd.xlane.f32.xlu0 %v2539_v4 }
0x1040   :  { %v2538_v53 = vpop.xlane.xlu1 %2537 }
0x1041   :  { %v2542_v46 = vmul.f32 %v2538_v53, %v3055_v10 }
0x1043   :  { %v2544_v0 = vsub.f32 %v2530_v39, %v2542_v46 }
0x1045   :  { %v2546_v48 = vmul.f32 %v2544_v0, %v2544_v0 }
0x1047   :  { %v2548_v17 = vsel %vm62_vm0, %v2546_v48, 0.0 }
0x1048   :  { %v2541_v61 = vpop.xlane.xlu0 %2540  ;;  %2549 = vadd.xlane.f32.xlu0 %v2548_v17 }
0x1049   :  { %v2543_v57 = vmul.f32 %v2541_v61, %v3055_v10 }
0x104b   :  { %v2545_v63 = vsub.f32 %v2531_v45, %v2543_v57 }
0x104d   :  { %v2547_v3 = vmul.f32 %v2545_v63, %v2545_v63 }
0x104f   :  { %v2551_v47 = vsel %vm62_vm0, %v2547_v3, 0.0 }
0x1050   :  { %2552 = vadd.xlane.f32.xlu2 %v2551_v47 }
0x10bb   :  { %v2550_v55 = vpop.xlane.xlu0 %2549 }
0x10bc   :  { %v2554_v5 = vmul.f32 %v2550_v55, %v3055_v10 }
0x10be   :  { %v2556_v62 = vadd.f32 1e-12, %v2554_v5 }
0x10c0   :  { %2918 = vrsqrt.f32 %v2556_v62  ;;  %vm2564_vm2 = vweird.f32 %v2556_v62 }
0x10c3   :  { %v2553_v6 = vpop.xlane.xlu2 %2552 }
0x10c4   :  { %v2555_v50 = vmul.f32 %v2553_v6, %v3055_v10 }
0x10c6   :  { %v2919_v11 = vpop.eup %2918  ;;  %v2557_v8 = vadd.f32 1e-12, %v2555_v50 }
0x10c7   :  { %v2559_v13 = vmul.f32 %v2919_v11, %v2556_v62  ;;  %vm2565_vm1 = vweird.f32 %v2919_v11 }
0x10c8   :  { %2920 = vrsqrt.f32 %v2557_v8  ;;  %vm2566_vm3 = vmor %vm2564_vm2, %vm2565_vm1  ;;  %vm2574_vm5 = vweird.f32 %v2557_v8 }
0x10c9   :  { %v2560_v15 = vmul.f32 %v2919_v11, %v2559_v13 }
0x10cb   :  { %v2561_v16 = vmul.f32 0.5, %v2560_v15 }
0x10cd   :  { %v2562_v18 = vsub.f32 1.5, %v2561_v16 }
0x10ce   :  { %v2921_v19 = vpop.eup %2920 }
0x10cf   :  { %v2563_v10 = vmul.f32 %v2919_v11, %v2562_v18  ;;  %v2569_v20 = vmul.f32 %v2921_v19, %v2557_v8  ;;  %vm2575_vm4 = vweird.f32 %v2921_v19 }
0x10d0   :  { %vm2576_vm6 = vmor %vm2574_vm5, %vm2575_vm4 }
0x10d1   :  { %v2567_v21 = vsel %vm2566_vm3, %v2919_v11, %v2563_v10  ;;  %v2570_v22 = vmul.f32 %v2921_v19, %v2569_v20 }
0x10d2   :  { %v2578_v26 = vmul.f32 %v2567_v21, %v2544_v0 }
0x10d3   :  { %v2571_v23 = vmul.f32 0.5, %v2570_v22 }
0x10d4   :  { %v2583_v29 = vmul.f32 %v2857_v24, %v2578_v26 }
0x10d5   :  { %v2572_v28 = vsub.f32 1.5, %v2571_v23 }
0x10d6   :  { %v2588_v14 = vadd.f32 %v2858_v1, %v2583_v29 }
0x10d7   :  { %v2573_v25 = vmul.f32 %v2921_v19, %v2572_v28 }
0x10d8   :  { %v2590_v33 = vpack.c.bf16 %v2588_v14, %v2588_v14 }
0x10d9   :  { %v2577_v30 = vsel %vm2576_vm6, %v2921_v19, %v2573_v25 }
0x10da   :  { %v2579_v31 = vmul.f32 %v2577_v30, %v2545_v63  ;;  %v2602_v34 = vunpack.c.l.b16 %v2590_v33 }
0x10dc   :  { %v2584_v32 = vmul.f32 %v2857_v24, %v2579_v31 }
0x10de   :  { %v2589_v38 = vadd.f32 %v2858_v1, %v2584_v32 }
0x10e0   :  { %v2591_v54 = vpack.c.bf16 %v2589_v38, %v2589_v38 }
0x10e2   :  { %v2603_v56 = vunpack.c.l.b16 %v2591_v54 }
0x10e4   :  { %v2604_v52 = vrot.slane %v2603_v56, 7 }
0x10e6   :  { %v2606_v27 = vsel %vm2605_vm7, %v2604_v52, %v2602_v34 }
0x10e7   :  { %v2607_v36 = vpack.c.b16 %v2606_v27, %v2606_v27 }
0x10e9   :  { %2799 = vmatmul.msk.bf16.vlgmr.msra.gmra.mxu0 %vm62_vm0, %v2607_v36 }
0x1166   :  { %v2632_v37 = vpop.f32.mrf.mxu0 }
0x1167   :  { %v2633_v40 = vadd.f32 %v2859_v35, %v2632_v37 }
0x1169   :  { %v2637_v41 = vrot.slane %v2633_v40, 1  ;;  %2639 = vst [vmem:[#allocation2] sm:$0x1] %v2633_v40 }
0x116b   :  { %2640 = vst [vmem:[#allocation2 + $0x1] sm:$0x1] %v2637_v41 }
0x116c   :  { %2653 = dma.vmem_to_hbm [thread:$0]  %s2646_s18, 32, %s2648_s9, [#allocation3], %s2954_s29, %s2954_s29, %s2956_s19  }
0x116e   :  { %v2634_v49 = vpop.f32.mrf.mxu0 }
0x116f   :  { %2946 = dma.done.wait [#allocation3], 32  }
0x1170   :  { %2947 = vsyncadd [#allocation3], 4294967264 }
0x1171   :  { %2658 = vsyncpa [#allocation3], 1 }

</bundles_post_ra>
